<compile_context>
chip_gen: v7x
topology: tpu7x:2x2x1
jax: 0.10.0
libtpu: 0.0.40
codegen_flags: <defaults>
</compile_context>

<pallas_src>
import jax
import jax.numpy as jnp
from jax import lax
from jax.experimental import pallas as pl
from jax.experimental.pallas import tpu as pltpu
import numpy as np

NUM_LAYERS = 2
EPS_LN = 1e-5      # nn.LayerNorm default eps
EPS_L2 = 1e-12     # F.normalize default eps


def _round_up(x, m):
    return ((x + m - 1) // m) * m


# ----------------------------------------------------------------------------
# Kernel (transposed layout: activations are (features, batch_block))
# ----------------------------------------------------------------------------
def _layernorm_cols(h, g, b):
    """LayerNorm over the feature axis (axis 0); one elementwise pass for the
    moments (biased variance, like nn.LayerNorm).  g, b are (F, 1)."""
    inv_f = 1.0 / h.shape[0]
    s1 = jnp.sum(h, axis=0, keepdims=True)
    s2 = jnp.sum(h * h, axis=0, keepdims=True)
    mu = s1 * inv_f
    var = s2 * inv_f - mu * mu
    return (h - mu) * lax.rsqrt(var + EPS_LN) * g + b


def transformer_encoder_kernel(
    x_ref,      # (Nb, input_size) raw row block of x (no host transpose/pad)
    wi_ref,     # (H, input_size)      input_proj weight
    wa_ref,     # (L, H+FF, H)  rows [0:H] = I + Wo@Wv (attn fused, residual folded)
                #               rows [H:]  = W1        (FFN first linear)
    w2_ref,     # (L, H, FF)    FFN second linear
    wp_ref,     # (OUT, H)      output_proj weight
    hv_ref,     # (H, 1+6L)     cols: [bi | per layer: bvo, g1, be1, b2, g2, be2]
    fv_ref,     # (FF, L)       cols: per layer b1
    ov_ref,     # (OUT, 3)      cols: [bp, gn, bn]
    out_ref,    # (OUT, Nb)     lane-dense output block (batch on the lane axis)
):
    f32 = jnp.float32
    H = wi_ref.shape[0]
    hv = hv_ref[...]

    # input_proj: h = Wi @ x^T + bi, contracting the shared `input_size` axis
    # directly — no transpose of x is materialized (host- or kernel-side).
    h = lax.dot_general(wi_ref[...], x_ref[...],
                        (((1,), (1,)), ((), ())),
                        preferred_element_type=f32) + hv[:, 0:1]

    # nn.TransformerEncoder: NUM_LAYERS post-norm layers, statically unrolled.
    for l in range(NUM_LAYERS):
        c = 1 + 6 * l
        bvo, g1, be1, b2, g2, be2 = (hv[:, c + j:c + j + 1] for j in range(6))

        # --- self-attention block ---
        # seq_len == 1 => softmax over one key == 1 => attn == out_proj(V).
        # Residual folded into the weight (Wvo' = I + Wo@Wv, exact algebra),
        # so the block is one matmul + bias followed by LayerNorm.
        h = _layernorm_cols(
            jnp.dot(wa_ref[l, :H, :], h, preferred_element_type=f32) + bvo,
            g1, be1)

        # --- feed-forward block: Linear -> ReLU -> Linear, residual, LayerNorm ---
        ff = jnp.maximum(
            jnp.dot(wa_ref[l, H:, :], h, preferred_element_type=f32)
            + fv_ref[:, l:l + 1], 0.0)
        ff = jnp.dot(w2_ref[l], ff, preferred_element_type=f32) + b2
        h = _layernorm_cols(h + ff, g2, be2)

    # output_proj -> LayerNorm -> L2 normalize over the feature axis.
    ov = ov_ref[...]
    y = jnp.dot(wp_ref[...], h, preferred_element_type=f32) + ov[:, 0:1]
    y = _layernorm_cols(y, ov[:, 1:2], ov[:, 2:3])
    # F.normalize(p=2): y / max(||y||, eps) == y * rsqrt(max(sum(y^2), eps^2))
    # (exact rsqrt; clamping sum-of-squares is equivalent since sqrt is monotone).
    sumsq = jnp.sum(y * y, axis=0, keepdims=True)
    out_ref[...] = y * lax.rsqrt(jnp.maximum(sumsq, EPS_L2 * EPS_L2))


# ----------------------------------------------------------------------------
# Parameters (PyTorch layout) + kernel-side preparation (fusion, packing)
# ----------------------------------------------------------------------------
def init_params(key, input_size, hidden_size, num_layers=NUM_LAYERS):
    """Deterministic synthetic parameters in native PyTorch layout."""
    H, FF, OUT = hidden_size, 4 * hidden_size, hidden_size // 2
    ks = iter(jax.random.split(key, 8 + 12 * num_layers))

    def w(shape, scale=0.05):
        return scale * jax.random.normal(next(ks), shape, dtype=jnp.float32)

    p = {"wi": w((H, input_size)), "bi": w((H,))}
    layers = []
    for _ in range(num_layers):
        layers.append(dict(
            in_proj_w=w((3 * H, H)), in_proj_b=w((3 * H,)),   # packed Q/K/V
            wo=w((H, H)), bo=w((H,)),                          # attn out_proj
            g1=1.0 + w((H,), 0.01), be1=w((H,), 0.01),
            w1=w((FF, H)), b1=w((FF,)),
            w2=w((H, FF)), b2=w((H,)),
            g2=1.0 + w((H,), 0.01), be2=w((H,), 0.01)))
    p["layers"] = layers
    p["wp"] = w((OUT, H)); p["bp"] = w((OUT,))
    p["gn"] = 1.0 + w((OUT,), 0.01); p["bn"] = w((OUT,), 0.01)
    return p


def prepare_kernel_params(p):
    """Fuse V/out_proj (+ residual) and pack everything into 7 slabs."""
    H = p["wi"].shape[0]

    wa, w2s, fv_cols = [], [], []
    hv_cols = [np.asarray(p["bi"], np.float32)]
    for lp in p["layers"]:
        wv = np.asarray(lp["in_proj_w"][2 * H:3 * H], np.float64)   # V slice
        bv = np.asarray(lp["in_proj_b"][2 * H:3 * H], np.float64)
        wo = np.asarray(lp["wo"], np.float64)
        bo = np.asarray(lp["bo"], np.float64)
        wvo = np.eye(H, dtype=np.float64) + wo @ wv                  # residual folded
        bvo = wo @ bv + bo
        wa.append(np.concatenate([wvo.astype(np.float32),
                                  np.asarray(lp["w1"], np.float32)], axis=0))
        w2s.append(np.asarray(lp["w2"], np.float32))
        hv_cols += [bvo.astype(np.float32),
                    np.asarray(lp["g1"], np.float32),
                    np.asarray(lp["be1"], np.float32),
                    np.asarray(lp["b2"], np.float32),
                    np.asarray(lp["g2"], np.float32),
                    np.asarray(lp["be2"], np.float32)]
        fv_cols.append(np.asarray(lp["b1"], np.float32))

    return dict(
        wi=jnp.asarray(p["wi"]),
        wa=jnp.asarray(np.stack(wa, axis=0)),             # (L, H+FF, H)
        w2=jnp.asarray(np.stack(w2s, axis=0)),            # (L, H, FF)
        wp=jnp.asarray(p["wp"]),
        hv=jnp.asarray(np.stack(hv_cols, axis=1)),        # (H, 1+6L)
        fv=jnp.asarray(np.stack(fv_cols, axis=1)),        # (FF, L)
        ov=jnp.asarray(np.stack([np.asarray(p["bp"], np.float32),
                                 np.asarray(p["gn"], np.float32),
                                 np.asarray(p["bn"], np.float32)], axis=1)),  # (OUT, 3)
    )


_WEIGHT_ORDER = ("wi", "wa", "w2", "wp", "hv", "fv", "ov")


# ----------------------------------------------------------------------------
# Wrapper
# ----------------------------------------------------------------------------
def _pick_block_cols(n, requested=None):
    """Lane-aligned batch-block size.

    Single block for small N (v5e/v6e: the grid is a serial loop, extra steps
    are ~0.35us pure overhead); <=512-column blocks when streaming larger N.
    Blocks are kept <= N so partial last blocks follow the standard masked
    path (no host-side padding of x or the output).  On v7x pass block_cols so
    the "parallel" axis has >=2 steps to shard across its 2 TensorCores.
    """
    if n <= 128:
        return n
    cap = (n // 128) * 128
    target = 512 if requested is None else max(128, _round_up(requested, 128))
    return min(target, cap)


def transformer_encoder_forward(x, kparams, block_cols=None, transposed_output=False):
    """x: (N, input_size) f32.  Returns (N, hidden//2) f32 — or the lane-dense
    transposed (hidden//2, N) layout when transposed_output=True, which lets a
    consumer under the same jit skip the final transpose pass entirely."""
    N, in_dim = x.shape
    H = kparams["wi"].shape[0]
    FF = kparams["w2"].shape[2]
    OUT = kparams["wp"].shape[0]
    L = kparams["wa"].shape[0]
    weights = [kparams[k] for k in _WEIGHT_ORDER]

    Nb = _pick_block_cols(N, block_cols)
    grid = (pl.cdiv(N, Nb),)

    def resident_spec(a):        # DMA'd once, stays VMEM-resident across the grid
        nd = a.ndim
        return pl.BlockSpec(a.shape, lambda i, _nd=nd: (0,) * _nd)

    flops = 2 * N * (in_dim * H + L * (H * H + 2 * H * FF) + H * OUT)
    weight_bytes = sum(int(np.prod(a.shape)) * 4 for a in weights)
    cost = pl.CostEstimate(
        flops=int(flops),
        transcendentals=int(N * (2 * L + 3)),   # LN rsqrts per layer + final LN + L2
        bytes_accessed=int(4 * N * (in_dim + OUT) + weight_bytes))

    # Working set (resident weights + double-buffered in/out blocks + the
    # (FF, Nb) FFN temporary) is well under 2 MiB here; re-derive against
    # v7x's 64 MiB physical VMEM (not 128 MiB) before scaling H/FF/Nb up.
    out_t = pl.pallas_call(
        transformer_encoder_kernel,
        out_shape=jax.ShapeDtypeStruct((OUT, N), jnp.float32),
        grid=grid,
        in_specs=[pl.BlockSpec((Nb, in_dim), lambda i: (i, 0))]
                 + [resident_spec(a) for a in weights],
        out_specs=pl.BlockSpec((OUT, Nb), lambda i: (0, i)),
        compiler_params=pltpu.CompilerParams(
            dimension_semantics=("parallel",),
            vmem_limit_bytes=32 * 1024 * 1024),
        cost_estimate=cost,
    )(x, *weights)

    if transposed_output:
        return out_t                 # (OUT, N), lane-dense, no extra pass
    return out_t.T                   # module-compatible (N, OUT)


# ----------------------------------------------------------------------------
# Pure-JAX reference mirroring the PyTorch forward (eval mode, row layout,
# unfused attention, two-pass LayerNorm) — validates the kernel, the Wvo+I
# residual fold and the one-pass LN moments.
# ----------------------------------------------------------------------------
def _hdot(a, b):
    return jnp.dot(a, b, precision=lax.Precision.HIGHEST)


def _layernorm_rows(h, g, b):
    mu = jnp.mean(h, axis=-1, keepdims=True)
    var = jnp.mean((h - mu) ** 2, axis=-1, keepdims=True)
    return (h - mu) * lax.rsqrt(var + EPS_LN) * g + b


def reference_forward(x, p):
    H = p["wi"].shape[0]
    h = _hdot(x, p["wi"].T) + p["bi"]
    for lp in p["layers"]:
        wv = lp["in_proj_w"][2 * H:3 * H]
        bv = lp["in_proj_b"][2 * H:3 * H]
        v = _hdot(h, wv.T) + bv                       # softmax over 1 key == 1
        sa = _hdot(v, lp["wo"].T) + lp["bo"]
        h = _layernorm_rows(h + sa, lp["g1"], lp["be1"])
        ff = jnp.maximum(_hdot(h, lp["w1"].T) + lp["b1"], 0.0)
        ff = _hdot(ff, lp["w2"].T) + lp["b2"]
        h = _layernorm_rows(h + ff, lp["g2"], lp["be2"])
    y = _hdot(h, p["wp"].T) + p["bp"]
    y = _layernorm_rows(y, p["gn"], p["bn"])
    n = jnp.sqrt(jnp.sum(y * y, axis=-1, keepdims=True))
    return y / jnp.maximum(n, EPS_L2)


if __name__ == "__main__":
    INPUT_SIZE, HIDDEN, BATCH = 16, 32, 300   # BATCH not a multiple of 128: exercises partial blocks

    key = jax.random.PRNGKey(0)
    kx, kp = jax.random.split(key)
    x = jax.random.normal(kx, (BATCH, INPUT_SIZE), dtype=jnp.float32)

    torch_style_params = init_params(kp, INPUT_SIZE, HIDDEN)
    kernel_params = prepare_kernel_params(torch_style_params)

    out = transformer_encoder_forward(x, kernel_params)   # auto Nb=256, grid=(2,)
    out = jax.block_until_ready(out)

    ref = jax.block_until_ready(reference_forward(x, torch_style_params))
    assert out.shape == (BATCH, HIDDEN // 2)
    np.testing.assert_allclose(np.asarray(out), np.asarray(ref), rtol=1e-5, atol=1e-5)

    print("KERNEL_OK")
</pallas_src>

<mosaic_0001>
module attributes {stable_mosaic.version = 11 : i64} {
  func.func @transformer_encoder_kernel(%arg0: i32, %arg1: memref<256x16xf32, #tpu.memory_space<vmem>>, %arg2: memref<32x16xf32, #tpu.memory_space<vmem>>, %arg3: memref<2x160x32xf32, #tpu.memory_space<vmem>>, %arg4: memref<2x32x128xf32, #tpu.memory_space<vmem>>, %arg5: memref<16x32xf32, #tpu.memory_space<vmem>>, %arg6: memref<32x13xf32, #tpu.memory_space<vmem>>, %arg7: memref<128x2xf32, #tpu.memory_space<vmem>>, %arg8: memref<16x3xf32, #tpu.memory_space<vmem>>, %arg9: memref<16x256xf32, #tpu.memory_space<vmem>>) attributes {dimension_semantics = [#tpu.dimension_semantics<parallel>], iteration_bounds = array<i64: 2>, scalar_prefetch = 0 : i64, scratch_operands = 0 : i64, tpu.core_type = #tpu.core_type<tc>, window_params = [{transform_indices = @transform_0, window_bounds = array<i64: 256, 16>}, {pipeline_mode = #tpu.pipeline_mode<synchronous>, transform_indices = @transform_1, window_bounds = array<i64: 32, 16>}, {pipeline_mode = #tpu.pipeline_mode<synchronous>, transform_indices = @transform_2, window_bounds = array<i64: 2, 160, 32>}, {pipeline_mode = #tpu.pipeline_mode<synchronous>, transform_indices = @transform_3, window_bounds = array<i64: 2, 32, 128>}, {pipeline_mode = #tpu.pipeline_mode<synchronous>, transform_indices = @transform_4, window_bounds = array<i64: 16, 32>}, {pipeline_mode = #tpu.pipeline_mode<synchronous>, transform_indices = @transform_5, window_bounds = array<i64: 32, 13>}, {pipeline_mode = #tpu.pipeline_mode<synchronous>, transform_indices = @transform_6, window_bounds = array<i64: 128, 2>}, {pipeline_mode = #tpu.pipeline_mode<synchronous>, transform_indices = @transform_7, window_bounds = array<i64: 16, 3>}, {transform_indices = @transform_8, window_bounds = array<i64: 16, 256>}]} {
    %c0 = arith.constant 0 : index
    %c0_0 = arith.constant 0 : index
    %0 = vector.load %arg6[%c0, %c0_0] : memref<32x13xf32, #tpu.memory_space<vmem>>, vector<32x13xf32>
    %c0_1 = arith.constant 0 : index
    %c0_2 = arith.constant 0 : index
    %1 = vector.load %arg2[%c0_1, %c0_2] : memref<32x16xf32, #tpu.memory_space<vmem>>, vector<32x16xf32>
    %c0_3 = arith.constant 0 : index
    %c0_4 = arith.constant 0 : index
    %2 = vector.load %arg1[%c0_3, %c0_4] : memref<256x16xf32, #tpu.memory_space<vmem>>, vector<256x16xf32>
    %cst = arith.constant dense<0.000000e+00> : vector<32x256xf32>
    %3 = tpu.matmul %1, %2, %cst {dimension_numbers = #tpu.dot_dimension_numbers<[1], [1], [0], [0], [0, 0, 1, 0], [], []>} : vector<32x16xf32>, vector<256x16xf32>, vector<32x256xf32> -> vector<32x256xf32>
    %4 = vector.extract_strided_slice %0 {offsets = [0, 0], sizes = [32, 1], strides = [1, 1]} : vector<32x13xf32> to vector<32x1xf32>
    %5 = vector.broadcast %4 : vector<32x1xf32> to vector<32x256xf32>
    %6 = arith.addf %3, %5 : vector<32x256xf32>
    %7 = vector.extract_strided_slice %0 {offsets = [0, 1], sizes = [32, 1], strides = [1, 1]} : vector<32x13xf32> to vector<32x1xf32>
    %8 = vector.extract_strided_slice %0 {offsets = [0, 2], sizes = [32, 1], strides = [1, 1]} : vector<32x13xf32> to vector<32x1xf32>
    %9 = vector.extract_strided_slice %0 {offsets = [0, 3], sizes = [32, 1], strides = [1, 1]} : vector<32x13xf32> to vector<32x1xf32>
    %10 = vector.extract_strided_slice %0 {offsets = [0, 4], sizes = [32, 1], strides = [1, 1]} : vector<32x13xf32> to vector<32x1xf32>
    %11 = vector.extract_strided_slice %0 {offsets = [0, 5], sizes = [32, 1], strides = [1, 1]} : vector<32x13xf32> to vector<32x1xf32>
    %12 = vector.extract_strided_slice %0 {offsets = [0, 6], sizes = [32, 1], strides = [1, 1]} : vector<32x13xf32> to vector<32x1xf32>
    %c0_5 = arith.constant 0 : index
    %c0_6 = arith.constant 0 : index
    %c0_7 = arith.constant 0 : index
    %13 = vector.load %arg3[%c0_5, %c0_6, %c0_7] : memref<2x160x32xf32, #tpu.memory_space<vmem>>, vector<1x32x32xf32>
    %14 = vector.shape_cast %13 : vector<1x32x32xf32> to vector<32x32xf32>
    %cst_8 = arith.constant dense<0.000000e+00> : vector<32x256xf32>
    %15 = tpu.matmul %14, %6, %cst_8 {dimension_numbers = #tpu.dot_dimension_numbers<[1], [0], [0], [1], [0, 0, 1, 1], [], []>} : vector<32x32xf32>, vector<32x256xf32>, vector<32x256xf32> -> vector<32x256xf32>
    %16 = vector.broadcast %7 : vector<32x1xf32> to vector<32x256xf32>
    %17 = arith.addf %15, %16 : vector<32x256xf32>
    %cst_9 = arith.constant dense<0.000000e+00> : vector<256xf32>
    %18 = vector.multi_reduction <add>, %17, %cst_9 [0] : vector<32x256xf32> to vector<256xf32>
    %19 = vector.shape_cast %18 : vector<256xf32> to vector<1x256xf32>
    %20 = arith.mulf %17, %17 : vector<32x256xf32>
    %cst_10 = arith.constant dense<0.000000e+00> : vector<256xf32>
    %21 = vector.multi_reduction <add>, %20, %cst_10 [0] : vector<32x256xf32> to vector<256xf32>
    %22 = vector.shape_cast %21 : vector<256xf32> to vector<1x256xf32>
    %cst_11 = arith.constant 3.125000e-02 : f32
    %23 = vector.broadcast %cst_11 : f32 to vector<1x256xf32>
    %24 = arith.mulf %19, %23 : vector<1x256xf32>
    %cst_12 = arith.constant 3.125000e-02 : f32
    %25 = vector.broadcast %cst_12 : f32 to vector<1x256xf32>
    %26 = arith.mulf %22, %25 : vector<1x256xf32>
    %27 = arith.mulf %24, %24 : vector<1x256xf32>
    %28 = arith.subf %26, %27 : vector<1x256xf32>
    %29 = vector.broadcast %24 : vector<1x256xf32> to vector<32x256xf32>
    %30 = arith.subf %17, %29 : vector<32x256xf32>
    %cst_13 = arith.constant 9.99999974E-6 : f32
    %31 = vector.broadcast %cst_13 : f32 to vector<1x256xf32>
    %32 = arith.addf %28, %31 : vector<1x256xf32>
    %33 = math.rsqrt %32 : vector<1x256xf32>
    %34 = vector.broadcast %33 : vector<1x256xf32> to vector<32x256xf32>
    %35 = arith.mulf %30, %34 : vector<32x256xf32>
    %36 = vector.broadcast %8 : vector<32x1xf32> to vector<32x256xf32>
    %37 = arith.mulf %35, %36 : vector<32x256xf32>
    %38 = vector.broadcast %9 : vector<32x1xf32> to vector<32x256xf32>
    %39 = arith.addf %37, %38 : vector<32x256xf32>
    %c0_14 = arith.constant 0 : index
    %c32 = arith.constant 32 : index
    %c0_15 = arith.constant 0 : index
    %40 = vector.load %arg3[%c0_14, %c32, %c0_15] : memref<2x160x32xf32, #tpu.memory_space<vmem>>, vector<1x128x32xf32>
    %41 = vector.shape_cast %40 : vector<1x128x32xf32> to vector<128x32xf32>
    %cst_16 = arith.constant dense<0.000000e+00> : vector<128x256xf32>
    %42 = tpu.matmul %41, %39, %cst_16 {dimension_numbers = #tpu.dot_dimension_numbers<[1], [0], [0], [1], [0, 0, 1, 1], [], []>} : vector<128x32xf32>, vector<32x256xf32>, vector<128x256xf32> -> vector<128x256xf32>
    %c0_17 = arith.constant 0 : index
    %c0_18 = arith.constant 0 : index
    %43 = vector.load %arg7[%c0_17, %c0_18] : memref<128x2xf32, #tpu.memory_space<vmem>>, vector<128x1xf32>
    %44 = vector.broadcast %43 : vector<128x1xf32> to vector<128x256xf32>
    %45 = arith.addf %42, %44 : vector<128x256xf32>
    %cst_19 = arith.constant 0.000000e+00 : f32
    %46 = vector.broadcast %cst_19 : f32 to vector<128x256xf32>
    %47 = arith.maximumf %45, %46 : vector<128x256xf32>
    %c0_20 = arith.constant 0 : index
    %c0_21 = arith.constant 0 : index
    %c0_22 = arith.constant 0 : index
    %48 = vector.load %arg4[%c0_20, %c0_21, %c0_22] : memref<2x32x128xf32, #tpu.memory_space<vmem>>, vector<1x32x128xf32>
    %49 = vector.shape_cast %48 : vector<1x32x128xf32> to vector<32x128xf32>
    %cst_23 = arith.constant dense<0.000000e+00> : vector<32x256xf32>
    %50 = tpu.matmul %49, %47, %cst_23 {dimension_numbers = #tpu.dot_dimension_numbers<[1], [0], [0], [1], [0, 0, 1, 1], [], []>} : vector<32x128xf32>, vector<128x256xf32>, vector<32x256xf32> -> vector<32x256xf32>
    %51 = vector.broadcast %10 : vector<32x1xf32> to vector<32x256xf32>
    %52 = arith.addf %50, %51 : vector<32x256xf32>
    %53 = arith.addf %39, %52 : vector<32x256xf32>
    %cst_24 = arith.constant dense<0.000000e+00> : vector<256xf32>
    %54 = vector.multi_reduction <add>, %53, %cst_24 [0] : vector<32x256xf32> to vector<256xf32>
    %55 = vector.shape_cast %54 : vector<256xf32> to vector<1x256xf32>
    %56 = arith.mulf %53, %53 : vector<32x256xf32>
    %cst_25 = arith.constant dense<0.000000e+00> : vector<256xf32>
    %57 = vector.multi_reduction <add>, %56, %cst_25 [0] : vector<32x256xf32> to vector<256xf32>
    %58 = vector.shape_cast %57 : vector<256xf32> to vector<1x256xf32>
    %cst_26 = arith.constant 3.125000e-02 : f32
    %59 = vector.broadcast %cst_26 : f32 to vector<1x256xf32>
    %60 = arith.mulf %55, %59 : vector<1x256xf32>
    %cst_27 = arith.constant 3.125000e-02 : f32
    %61 = vector.broadcast %cst_27 : f32 to vector<1x256xf32>
    %62 = arith.mulf %58, %61 : vector<1x256xf32>
    %63 = arith.mulf %60, %60 : vector<1x256xf32>
    %64 = arith.subf %62, %63 : vector<1x256xf32>
    %65 = vector.broadcast %60 : vector<1x256xf32> to vector<32x256xf32>
    %66 = arith.subf %53, %65 : vector<32x256xf32>
    %cst_28 = arith.constant 9.99999974E-6 : f32
    %67 = vector.broadcast %cst_28 : f32 to vector<1x256xf32>
    %68 = arith.addf %64, %67 : vector<1x256xf32>
    %69 = math.rsqrt %68 : vector<1x256xf32>
    %70 = vector.broadcast %69 : vector<1x256xf32> to vector<32x256xf32>
    %71 = arith.mulf %66, %70 : vector<32x256xf32>
    %72 = vector.broadcast %11 : vector<32x1xf32> to vector<32x256xf32>
    %73 = arith.mulf %71, %72 : vector<32x256xf32>
    %74 = vector.broadcast %12 : vector<32x1xf32> to vector<32x256xf32>
    %75 = arith.addf %73, %74 : vector<32x256xf32>
    %76 = vector.extract_strided_slice %0 {offsets = [0, 7], sizes = [32, 1], strides = [1, 1]} : vector<32x13xf32> to vector<32x1xf32>
    %77 = vector.extract_strided_slice %0 {offsets = [0, 8], sizes = [32, 1], strides = [1, 1]} : vector<32x13xf32> to vector<32x1xf32>
    %78 = vector.extract_strided_slice %0 {offsets = [0, 9], sizes = [32, 1], strides = [1, 1]} : vector<32x13xf32> to vector<32x1xf32>
    %79 = vector.extract_strided_slice %0 {offsets = [0, 10], sizes = [32, 1], strides = [1, 1]} : vector<32x13xf32> to vector<32x1xf32>
    %80 = vector.extract_strided_slice %0 {offsets = [0, 11], sizes = [32, 1], strides = [1, 1]} : vector<32x13xf32> to vector<32x1xf32>
    %81 = vector.extract_strided_slice %0 {offsets = [0, 12], sizes = [32, 1], strides = [1, 1]} : vector<32x13xf32> to vector<32x1xf32>
    %c1 = arith.constant 1 : index
    %c0_29 = arith.constant 0 : index
    %c0_30 = arith.constant 0 : index
    %82 = vector.load %arg3[%c1, %c0_29, %c0_30] : memref<2x160x32xf32, #tpu.memory_space<vmem>>, vector<1x32x32xf32>
    %83 = vector.shape_cast %82 : vector<1x32x32xf32> to vector<32x32xf32>
    %cst_31 = arith.constant dense<0.000000e+00> : vector<32x256xf32>
    %84 = tpu.matmul %83, %75, %cst_31 {dimension_numbers = #tpu.dot_dimension_numbers<[1], [0], [0], [1], [0, 0, 1, 1], [], []>} : vector<32x32xf32>, vector<32x256xf32>, vector<32x256xf32> -> vector<32x256xf32>
    %85 = vector.broadcast %76 : vector<32x1xf32> to vector<32x256xf32>
    %86 = arith.addf %84, %85 : vector<32x256xf32>
    %cst_32 = arith.constant dense<0.000000e+00> : vector<256xf32>
    %87 = vector.multi_reduction <add>, %86, %cst_32 [0] : vector<32x256xf32> to vector<256xf32>
    %88 = vector.shape_cast %87 : vector<256xf32> to vector<1x256xf32>
    %89 = arith.mulf %86, %86 : vector<32x256xf32>
    %cst_33 = arith.constant dense<0.000000e+00> : vector<256xf32>
    %90 = vector.multi_reduction <add>, %89, %cst_33 [0] : vector<32x256xf32> to vector<256xf32>
    %91 = vector.shape_cast %90 : vector<256xf32> to vector<1x256xf32>
    %cst_34 = arith.constant 3.125000e-02 : f32
    %92 = vector.broadcast %cst_34 : f32 to vector<1x256xf32>
    %93 = arith.mulf %88, %92 : vector<1x256xf32>
    %cst_35 = arith.constant 3.125000e-02 : f32
    %94 = vector.broadcast %cst_35 : f32 to vector<1x256xf32>
    %95 = arith.mulf %91, %94 : vector<1x256xf32>
    %96 = arith.mulf %93, %93 : vector<1x256xf32>
    %97 = arith.subf %95, %96 : vector<1x256xf32>
    %98 = vector.broadcast %93 : vector<1x256xf32> to vector<32x256xf32>
    %99 = arith.subf %86, %98 : vector<32x256xf32>
    %cst_36 = arith.constant 9.99999974E-6 : f32
    %100 = vector.broadcast %cst_36 : f32 to vector<1x256xf32>
    %101 = arith.addf %97, %100 : vector<1x256xf32>
    %102 = math.rsqrt %101 : vector<1x256xf32>
    %103 = vector.broadcast %102 : vector<1x256xf32> to vector<32x256xf32>
    %104 = arith.mulf %99, %103 : vector<32x256xf32>
    %105 = vector.broadcast %77 : vector<32x1xf32> to vector<32x256xf32>
    %106 = arith.mulf %104, %105 : vector<32x256xf32>
    %107 = vector.broadcast %78 : vector<32x1xf32> to vector<32x256xf32>
    %108 = arith.addf %106, %107 : vector<32x256xf32>
    %c1_37 = arith.constant 1 : index
    %c32_38 = arith.constant 32 : index
    %c0_39 = arith.constant 0 : index
    %109 = vector.load %arg3[%c1_37, %c32_38, %c0_39] : memref<2x160x32xf32, #tpu.memory_space<vmem>>, vector<1x128x32xf32>
    %110 = vector.shape_cast %109 : vector<1x128x32xf32> to vector<128x32xf32>
    %cst_40 = arith.constant dense<0.000000e+00> : vector<128x256xf32>
    %111 = tpu.matmul %110, %108, %cst_40 {dimension_numbers = #tpu.dot_dimension_numbers<[1], [0], [0], [1], [0, 0, 1, 1], [], []>} : vector<128x32xf32>, vector<32x256xf32>, vector<128x256xf32> -> vector<128x256xf32>
    %c0_41 = arith.constant 0 : index
    %c1_42 = arith.constant 1 : index
    %112 = vector.load %arg7[%c0_41, %c1_42] : memref<128x2xf32, #tpu.memory_space<vmem>>, vector<128x1xf32>
    %113 = vector.broadcast %112 : vector<128x1xf32> to vector<128x256xf32>
    %114 = arith.addf %111, %113 : vector<128x256xf32>
    %cst_43 = arith.constant 0.000000e+00 : f32
    %115 = vector.broadcast %cst_43 : f32 to vector<128x256xf32>
    %116 = arith.maximumf %114, %115 : vector<128x256xf32>
    %c1_44 = arith.constant 1 : index
    %c0_45 = arith.constant 0 : index
    %c0_46 = arith.constant 0 : index
    %117 = vector.load %arg4[%c1_44, %c0_45, %c0_46] : memref<2x32x128xf32, #tpu.memory_space<vmem>>, vector<1x32x128xf32>
    %118 = vector.shape_cast %117 : vector<1x32x128xf32> to vector<32x128xf32>
    %cst_47 = arith.constant dense<0.000000e+00> : vector<32x256xf32>
    %119 = tpu.matmul %118, %116, %cst_47 {dimension_numbers = #tpu.dot_dimension_numbers<[1], [0], [0], [1], [0, 0, 1, 1], [], []>} : vector<32x128xf32>, vector<128x256xf32>, vector<32x256xf32> -> vector<32x256xf32>
    %120 = vector.broadcast %79 : vector<32x1xf32> to vector<32x256xf32>
    %121 = arith.addf %119, %120 : vector<32x256xf32>
    %122 = arith.addf %108, %121 : vector<32x256xf32>
    %cst_48 = arith.constant dense<0.000000e+00> : vector<256xf32>
    %123 = vector.multi_reduction <add>, %122, %cst_48 [0] : vector<32x256xf32> to vector<256xf32>
    %124 = vector.shape_cast %123 : vector<256xf32> to vector<1x256xf32>
    %125 = arith.mulf %122, %122 : vector<32x256xf32>
    %cst_49 = arith.constant dense<0.000000e+00> : vector<256xf32>
    %126 = vector.multi_reduction <add>, %125, %cst_49 [0] : vector<32x256xf32> to vector<256xf32>
    %127 = vector.shape_cast %126 : vector<256xf32> to vector<1x256xf32>
    %cst_50 = arith.constant 3.125000e-02 : f32
    %128 = vector.broadcast %cst_50 : f32 to vector<1x256xf32>
    %129 = arith.mulf %124, %128 : vector<1x256xf32>
    %cst_51 = arith.constant 3.125000e-02 : f32
    %130 = vector.broadcast %cst_51 : f32 to vector<1x256xf32>
    %131 = arith.mulf %127, %130 : vector<1x256xf32>
    %132 = arith.mulf %129, %129 : vector<1x256xf32>
    %133 = arith.subf %131, %132 : vector<1x256xf32>
    %134 = vector.broadcast %129 : vector<1x256xf32> to vector<32x256xf32>
    %135 = arith.subf %122, %134 : vector<32x256xf32>
    %cst_52 = arith.constant 9.99999974E-6 : f32
    %136 = vector.broadcast %cst_52 : f32 to vector<1x256xf32>
    %137 = arith.addf %133, %136 : vector<1x256xf32>
    %138 = math.rsqrt %137 : vector<1x256xf32>
    %139 = vector.broadcast %138 : vector<1x256xf32> to vector<32x256xf32>
    %140 = arith.mulf %135, %139 : vector<32x256xf32>
    %141 = vector.broadcast %80 : vector<32x1xf32> to vector<32x256xf32>
    %142 = arith.mulf %140, %141 : vector<32x256xf32>
    %143 = vector.broadcast %81 : vector<32x1xf32> to vector<32x256xf32>
    %144 = arith.addf %142, %143 : vector<32x256xf32>
    %c0_53 = arith.constant 0 : index
    %c0_54 = arith.constant 0 : index
    %145 = vector.load %arg8[%c0_53, %c0_54] : memref<16x3xf32, #tpu.memory_space<vmem>>, vector<16x3xf32>
    %c0_55 = arith.constant 0 : index
    %c0_56 = arith.constant 0 : index
    %146 = vector.load %arg5[%c0_55, %c0_56] : memref<16x32xf32, #tpu.memory_space<vmem>>, vector<16x32xf32>
    %cst_57 = arith.constant dense<0.000000e+00> : vector<16x256xf32>
    %147 = tpu.matmul %146, %144, %cst_57 {dimension_numbers = #tpu.dot_dimension_numbers<[1], [0], [0], [1], [0, 0, 1, 1], [], []>} : vector<16x32xf32>, vector<32x256xf32>, vector<16x256xf32> -> vector<16x256xf32>
    %148 = vector.extract_strided_slice %145 {offsets = [0, 0], sizes = [16, 1], strides = [1, 1]} : vector<16x3xf32> to vector<16x1xf32>
    %149 = vector.broadcast %148 : vector<16x1xf32> to vector<16x256xf32>
    %150 = arith.addf %147, %149 : vector<16x256xf32>
    %151 = vector.extract_strided_slice %145 {offsets = [0, 1], sizes = [16, 1], strides = [1, 1]} : vector<16x3xf32> to vector<16x1xf32>
    %152 = vector.extract_strided_slice %145 {offsets = [0, 2], sizes = [16, 1], strides = [1, 1]} : vector<16x3xf32> to vector<16x1xf32>
    %cst_58 = arith.constant dense<0.000000e+00> : vector<256xf32>
    %153 = vector.multi_reduction <add>, %150, %cst_58 [0] : vector<16x256xf32> to vector<256xf32>
    %154 = vector.shape_cast %153 : vector<256xf32> to vector<1x256xf32>
    %155 = arith.mulf %150, %150 : vector<16x256xf32>
    %cst_59 = arith.constant dense<0.000000e+00> : vector<256xf32>
    %156 = vector.multi_reduction <add>, %155, %cst_59 [0] : vector<16x256xf32> to vector<256xf32>
    %157 = vector.shape_cast %156 : vector<256xf32> to vector<1x256xf32>
    %cst_60 = arith.constant 6.250000e-02 : f32
    %158 = vector.broadcast %cst_60 : f32 to vector<1x256xf32>
    %159 = arith.mulf %154, %158 : vector<1x256xf32>
    %cst_61 = arith.constant 6.250000e-02 : f32
    %160 = vector.broadcast %cst_61 : f32 to vector<1x256xf32>
    %161 = arith.mulf %157, %160 : vector<1x256xf32>
    %162 = arith.mulf %159, %159 : vector<1x256xf32>
    %163 = arith.subf %161, %162 : vector<1x256xf32>
    %164 = vector.broadcast %159 : vector<1x256xf32> to vector<16x256xf32>
    %165 = arith.subf %150, %164 : vector<16x256xf32>
    %cst_62 = arith.constant 9.99999974E-6 : f32
    %166 = vector.broadcast %cst_62 : f32 to vector<1x256xf32>
    %167 = arith.addf %163, %166 : vector<1x256xf32>
    %168 = math.rsqrt %167 : vector<1x256xf32>
    %169 = vector.broadcast %168 : vector<1x256xf32> to vector<16x256xf32>
    %170 = arith.mulf %165, %169 : vector<16x256xf32>
    %171 = vector.broadcast %151 : vector<16x1xf32> to vector<16x256xf32>
    %172 = arith.mulf %170, %171 : vector<16x256xf32>
    %173 = vector.broadcast %152 : vector<16x1xf32> to vector<16x256xf32>
    %174 = arith.addf %172, %173 : vector<16x256xf32>
    %175 = arith.mulf %174, %174 : vector<16x256xf32>
    %cst_63 = arith.constant dense<0.000000e+00> : vector<256xf32>
    %176 = vector.multi_reduction <add>, %175, %cst_63 [0] : vector<16x256xf32> to vector<256xf32>
    %177 = vector.shape_cast %176 : vector<256xf32> to vector<1x256xf32>
    %cst_64 = arith.constant 1.000000e-24 : f32
    %178 = vector.broadcast %cst_64 : f32 to vector<1x256xf32>
    %179 = arith.maximumf %177, %178 : vector<1x256xf32>
    %180 = math.rsqrt %179 : vector<1x256xf32>
    %181 = vector.broadcast %180 : vector<1x256xf32> to vector<16x256xf32>
    %182 = arith.mulf %174, %181 : vector<16x256xf32>
    %c0_65 = arith.constant 0 : index
    %c0_66 = arith.constant 0 : index
    %183 = vector.load %arg9[%c0_65, %c0_66] : memref<16x256xf32, #tpu.memory_space<vmem>>, vector<16x256xf32>
    tpu.vector_store %arg9[%c0_65, %c0_66], %182 {strides = array<i32>} : memref<16x256xf32, #tpu.memory_space<vmem>>, vector<16x256xf32>,
    return
  }
  func.func @transform_0(%arg0: i32) -> (i32, i32) {
    %c0_i32 = arith.constant 0 : i32
    %c0_i32_0 = arith.constant 0 : i32
    return %arg0, %c0_i32 : i32, i32
  }
  func.func @transform_1(%arg0: i32) -> (i32, i32) {
    %c0_i32 = arith.constant 0 : i32
    %c0_i32_0 = arith.constant 0 : i32
    %c0_i32_1 = arith.constant 0 : i32
    return %c0_i32, %c0_i32_0 : i32, i32
  }
  func.func @transform_2(%arg0: i32) -> (i32, i32, i32) {
    %c0_i32 = arith.constant 0 : i32
    %c0_i32_0 = arith.constant 0 : i32
    %c0_i32_1 = arith.constant 0 : i32
    %c0_i32_2 = arith.constant 0 : i32
    return %c0_i32, %c0_i32_0, %c0_i32_1 : i32, i32, i32
  }
  func.func @transform_3(%arg0: i32) -> (i32, i32, i32) {
    %c0_i32 = arith.constant 0 : i32
    %c0_i32_0 = arith.constant 0 : i32
    %c0_i32_1 = arith.constant 0 : i32
    %c0_i32_2 = arith.constant 0 : i32
    return %c0_i32, %c0_i32_0, %c0_i32_1 : i32, i32, i32
  }
  func.func @transform_4(%arg0: i32) -> (i32, i32) {
    %c0_i32 = arith.constant 0 : i32
    %c0_i32_0 = arith.constant 0 : i32
    %c0_i32_1 = arith.constant 0 : i32
    return %c0_i32, %c0_i32_0 : i32, i32
  }
  func.func @transform_5(%arg0: i32) -> (i32, i32) {
    %c0_i32 = arith.constant 0 : i32
    %c0_i32_0 = arith.constant 0 : i32
    %c0_i32_1 = arith.constant 0 : i32
    return %c0_i32, %c0_i32_0 : i32, i32
  }
  func.func @transform_6(%arg0: i32) -> (i32, i32) {
    %c0_i32 = arith.constant 0 : i32
    %c0_i32_0 = arith.constant 0 : i32
    %c0_i32_1 = arith.constant 0 : i32
    return %c0_i32, %c0_i32_0 : i32, i32
  }
  func.func @transform_7(%arg0: i32) -> (i32, i32) {
    %c0_i32 = arith.constant 0 : i32
    %c0_i32_0 = arith.constant 0 : i32
    %c0_i32_1 = arith.constant 0 : i32
    return %c0_i32, %c0_i32_0 : i32, i32
  }
  func.func @transform_8(%arg0: i32) -> (i32, i32) {
    %c0_i32 = arith.constant 0 : i32
    %c0_i32_0 = arith.constant 0 : i32
    return %c0_i32, %arg0 : i32, i32
  }
}

</mosaic_0001>

<bundles_post_ra>
// kernel: tpu_custom_call.1
= control target key start
LH: loop header
LB: loop body
LE: loop exit
PB: predicated region body
PF: predicated region fallthrough
CT: control target
= control target key end

     0   :  { %13 = vsyncpa [#allocation3], 0  ;;  %s4018_s0 = inlined_call_operand.vmem [shape: f32[300,16], index: 0, kind: input, shape index: {}]   ;;  %s4019_s1 = inlined_call_operand.vmem [shape: f32[32,16], index: 1, kind: input, shape index: {}]   ;;  %s4020_s2 = inlined_call_operand.vmem [shape: f32[2,160,32], index: 2, kind: input, shape index: {}]   ;;  %s4021_s3 = inlined_call_operand.vmem [shape: f32[2,32,128], index: 3, kind: input, shape index: {}]   ;;  %s4022_s4 = inlined_call_operand.vmem [shape: f32[16,32], index: 4, kind: input, shape index: {}]   ;;  %s4023_s5 = inlined_call_operand.vmem [shape: f32[32,13], index: 5, kind: input, shape index: {}]   ;;  %s4024_s6 = inlined_call_operand.vmem [shape: f32[128,2], index: 6, kind: input, shape index: {}]   ;;  %s4025_s7 = inlined_call_operand.vmem [shape: f32[16,3], index: 7, kind: input, shape index: {}]   ;;  %s4026_s8 = inlined_call_operand.hbm [shape: f32[16,300], index: 8, kind: output, shape index: {}]  }
   0x1   :  { %15 = vsyncpa [#allocation3 + $0x1], 0  ;;  %s3074_s27 = smov 0   ;;  %s3076_s28 = smov 0  }
   0x2   :  { %s3078_s29 = smov 0   ;;  %s3080_s30 = smov 0  }
   0x3 LB: > { %s3095_s9 = sadd.s32 4294967295, %s3010_s30   ;;  %s2508_s10 = sadd.s32 4294967294, %s3010_s30   ;;  %s3010_s30 = sphi %s3080_s30, %s4034_s30   ;;  %s3006_s29 = sphi %s3078_s29, %s4033_s29   ;;  %s3002_s28 = sphi %s3076_s28, %s4032_s28   ;;  %s2998_s27 = sphi %s3074_s27, %s4031_s27  }
   0x4   : > { %s3099_s11 = sadd.s32 1, %s3010_s30   ;;  %s201_s12 = sadd.s32 1, %s3006_s29 }
   0x5   : > { %s198_s13 = ssub.s32 %s3010_s30, %s3099_s11  ;;  %p211_p0 = scmp.ne.s32.totalorder %s3006_s29, %s3002_s28 }
   0x6   : > { %p199_p1 = scmp.eq.s32.totalorder %s198_s13, 0  ;;  %p212_p2 = scmp.eq.s32.totalorder %s3095_s9, 1 }
   0x7   : > { %p217_p3 = scmp.ne.s32.totalorder %s3002_s28, %s2998_s27  ;;  %p218_p4 = scmp.eq.s32.totalorder %s2508_s10, 1 }
   0x8   : > { %s3110_s14 = scalar_select %p199_p1, %s3006_s29, %s201_s12  }
   0x9   : > { %p3112_p5 = por %p212_p2, %p211_p0  ;;  %p3116_p6 = por %p218_p4, %p217_p3 }
   0xa   : > { %p2511_p7 = scmp.ge.s32.totalorder %s3010_s30, 1  ;;  %p274_p8 = scmp.lt.s32.totalorder %s3010_s30, 3 }
   0xc   : > { %p275_p9 = pnand %p2511_p7, %p274_p8 }
   0xd   : > { %s2513_s17 = sshll.u32 (!%p275_p9), %s3095_s9, 5  ;;  %vm391_vm0 = vcmask (!%p275_p9), 130048   ;;  %v3126_v0 = vld [vmem:[%s4019_s1] sm:$0xff] (!%p275_p9)  ;;  %v3012_v1 = vmov (!%p275_p9), 0   ;;  %v3141_v3 = vld [vmem:[%s4023_s5 + $0x10] sm:$0xff] (!%p275_p9)  ;;  %v3146_v4 = vld [vmem:[%s4023_s5 + $0x8] sm:$0xff] (!%p275_p9) }
   0xe   : > { %278 = sbr.rel (%p275_p9) target bundleno = 2317 (0x90d), region = 52  ;;  %p317_p10 = scmp.lt.s32.totalorder (!%p275_p9), %s2513_s17, 37  ;;  %2662 = vmatprep.mubr.msk.f32.mxu0 (!%p275_p9), %vm391_vm0, %v3126_v0  ;;  %2876 = vset.pattern.permute.xlu0 (!%p275_p9), %v3012_v1  ;;  %v3134_v2 = vld [vmem:[%s4023_s5] sm:$0xff] (!%p275_p9)  ;;  %v3152_v5 = vld [vmem:[%s4023_s5 + $0x18] sm:$0xff] (!%p275_p9)  ;;  %vm3161_vm1 = vmpackc.low (!%p275_p9), %vm391_vm0, %vm391_vm0  ;;  %v3013_v58 = vmov (!%p275_p9), 0.0   ;;  %v3014_v59 = vmov (!%p275_p9), 1  }
   0xf   : > { %373 = vperm.xlu0 (!%p275_p9), %2876, %v3134_v2   ;;  %2877 = vset.pattern.permute.xlu1 (!%p275_p9), %v3012_v1  ;;  %v336_v55 = vld [vmem:[%s4019_s1 + $0x8] sm:$0xff] (!%p275_p9)  ;;  %v337_v56 = vld [vmem:[%s4019_s1 + $0x10] sm:$0xff] (!%p275_p9)  ;;  %v338_v57 = vld [vmem:[%s4019_s1 + $0x18] sm:$0xff] (!%p275_p9)  ;;  %v3015_v60 = vmov (!%p275_p9), 2   ;;  %v3016_v61 = vmov (!%p275_p9), 3   ;;  %vm609_vm2 = vcmask (!%p275_p9), 261120  }
  0x10   : > { %383 = vperm.xlu1 (!%p275_p9), %2877, %v3141_v3   ;;  %686 = vmatprep.mubr.f32.mxu1 (!%p275_p9), %v3013_v58  ;;  %s309_s26 = sand.u32 (!%p275_p9), 1, %s3002_s28  }
  0x11   : > { %s2512_s10 = sshll.u32 (!%p275_p9), %s309_s26, 5  ;;  %s3952_s13 = scalar_lea.sflag (!%p275_p9), [#allocation3], %s309_s26 }
  0x13   : > { %378 = vperm.xlu0 (!%p275_p9), %2876, %v3146_v4  }
  0x14   : > { %388 = vperm.xlu1 (!%p275_p9), %2877, %v3152_v5  }
  0x15   : > { %s4036_s17 = smov (!%p317_p10, %s2513_s17), 37  ;;  %s2618_s18 = sshll.u32 (%p3112_p5), %s3095_s9, 1 }
  0x16   : > { %s2514_s12 = sshll.u32 %s4036_s17, 3 }
  0x17   : > { %s3157_s19 = scalar_lea.vmem %s4018_s0, %s2514_s12  ;;  %2878 = vset.pattern.permute.xlu0 %v3014_v59  ;;  %s311_s12 = scalar_lea.vmem [#allocation2], %s2512_s10 }
  0x18   : > { %v355_v7 = vld [vmem:[%s3157_s19 + $0x80] sm:$0xff]  ;;  %v356_v8 = vld [vmem:[%s3157_s19 + $0x88] sm:$0xff]  ;;  %v357_v12 = vld [vmem:[%s3157_s19 + $0x90] sm:$0xff]  ;;  %2879 = vset.pattern.permute.xlu1 %v3014_v59  ;;  %594 = vperm.xlu0 %2878, %v3134_v2  }
  0x19   : > { %v339_v9 = vld [vmem:[%s3157_s19] sm:$0xff]  ;;  %v2670_v10 = vpack.c.bf16 %v356_v8, %v355_v7  ;;  %v340_v11 = vld [vmem:[%s3157_s19 + $0x8] sm:$0xff]  ;;  %v358_v13 = vld [vmem:[%s3157_s19 + $0x98] sm:$0xff]  ;;  %598 = vperm.xlu1 %2879, %v3146_v4  }
  0x1a   : > { %v2673_v14 = vpack.c.bf16 %v340_v11, %v339_v9  ;;  %v2676_v15 = vpack.c.bf16 %v358_v13, %v357_v12  ;;  %v341_v16 = vld [vmem:[%s3157_s19 + $0x10] sm:$0xff]  ;;  %v342_v17 = vld [vmem:[%s3157_s19 + $0x18] sm:$0xff]  ;;  %v359_v18 = vld [vmem:[%s3157_s19 + $0xa0] sm:$0xff] }
  0x1b   : > { %2672 = vmatprep.subr.msk.bf16.mxu0 %vm3161_vm1, %v2670_v10  ;;  %v360_v19 = vld [vmem:[%s3157_s19 + $0xa8] sm:$0xff]  ;;  %v2679_v20 = vpack.c.bf16 %v342_v17, %v341_v16  ;;  %v343_v22 = vld [vmem:[%s3157_s19 + $0x20] sm:$0xff]  ;;  %v361_v24 = vld [vmem:[%s3157_s19 + $0xb0] sm:$0xff] }
  0x1c   : > { %2675 = vmatpush3.bf16.xpose.msk.msra.mxu0 %vm3161_vm1, %v2673_v14  ;;  %v2682_v21 = vpack.c.bf16 %v360_v19, %v359_v18  ;;  %v344_v23 = vld [vmem:[%s3157_s19 + $0x28] sm:$0xff]  ;;  %v362_v25 = vld [vmem:[%s3157_s19 + $0xb8] sm:$0xff]  ;;  %v345_v28 = vld [vmem:[%s3157_s19 + $0x30] sm:$0xff]  ;;  %606 = vperm.xlu0 %2878, %v3152_v5  }
  0x1d   : > { %2678 = vmatprep.subr.msk.bf16.mxu0 %vm3161_vm1, %v2676_v15  ;;  %v2685_v26 = vpack.c.bf16 %v344_v23, %v343_v22  ;;  %v2688_v27 = vpack.c.bf16 %v362_v25, %v361_v24  ;;  %v346_v29 = vld [vmem:[%s3157_s19 + $0x38] sm:$0xff]  ;;  %v363_v30 = vld [vmem:[%s3157_s19 + $0xc0] sm:$0xff]  ;;  %v364_v31 = vld [vmem:[%s3157_s19 + $0xc8] sm:$0xff]  ;;  %602 = vperm.xlu1 %2879, %v3141_v3  }
  0x1e   : > { %v2691_v32 = vpack.c.bf16 %v346_v29, %v345_v28  ;;  %v2694_v33 = vpack.c.bf16 %v364_v31, %v363_v30  ;;  %v347_v34 = vld [vmem:[%s3157_s19 + $0x40] sm:$0xff]  ;;  %v348_v35 = vld [vmem:[%s3157_s19 + $0x48] sm:$0xff]  ;;  %v365_v36 = vld [vmem:[%s3157_s19 + $0xd0] sm:$0xff] }
  0x1f   : > { %v366_v37 = vld [vmem:[%s3157_s19 + $0xd8] sm:$0xff]  ;;  %v2697_v38 = vpack.c.bf16 %v348_v35, %v347_v34  ;;  %v349_v40 = vld [vmem:[%s3157_s19 + $0x50] sm:$0xff]  ;;  %v367_v42 = vld [vmem:[%s3157_s19 + $0xe0] sm:$0xff] }
  0x20   : > { %v2700_v39 = vpack.c.bf16 %v366_v37, %v365_v36  ;;  %v350_v41 = vld [vmem:[%s3157_s19 + $0x58] sm:$0xff]  ;;  %v368_v43 = vld [vmem:[%s3157_s19 + $0xe8] sm:$0xff]  ;;  %v351_v46 = vld [vmem:[%s3157_s19 + $0x60] sm:$0xff]  ;;  %2881 = vset.pattern.permute.xlu0 %v3015_v60 }
  0x21   : > { %v2703_v44 = vpack.c.bf16 %v350_v41, %v349_v40  ;;  %v2706_v45 = vpack.c.bf16 %v368_v43, %v367_v42  ;;  %v352_v47 = vld [vmem:[%s3157_s19 + $0x68] sm:$0xff]  ;;  %v369_v48 = vld [vmem:[%s3157_s19 + $0xf0] sm:$0xff]  ;;  %v370_v49 = vld [vmem:[%s3157_s19 + $0xf8] sm:$0xff]  ;;  %2880 = vset.pattern.permute.xlu1 %v3015_v60  ;;  %788 = vperm.xlu0 %2881, %v3146_v4  }
  0x22   : > { %v2709_v50 = vpack.c.bf16 %v352_v47, %v351_v46  ;;  %v2712_v51 = vpack.c.bf16 %v370_v49, %v369_v48  ;;  %v353_v52 = vld [vmem:[%s3157_s19 + $0x70] sm:$0xff]  ;;  %v354_v53 = vld [vmem:[%s3157_s19 + $0x78] sm:$0xff]  ;;  %784 = vperm.xlu1 %2880, %v3134_v2   ;;  %v590_v28 = vld [vmem:[%s4020_s2 + $0x8] sm:$0xff]  ;;  %s2434_s19 = ssub.s32 (%p3112_p5), 3, %s2618_s18 }
  0x23   : > { %v2715_v54 = vpack.c.bf16 %v354_v53, %v353_v52  ;;  %v591_v29 = vld [vmem:[%s4020_s2 + $0x10] sm:$0xff]  ;;  %v592_v30 = vld [vmem:[%s4020_s2 + $0x18] sm:$0xff]  ;;  %v3292_v31 = vld [vmem:[%s4024_s6] sm:$0xff]  ;;  %p2435_p11 = scmp.lt.s32.totalorder (%p3112_p5), %s2434_s19, 2 }
  0x24   : > { %2681 = vmatpush3.bf16.xpose.msk.msra.mxu0 %vm3161_vm1, %v2679_v20  ;;  %v3303_v34 = vld [vmem:[%s4024_s6 + $0x10] sm:$0xff]  ;;  %v3309_v37 = vld [vmem:[%s4024_s6 + $0x20] sm:$0xff]  ;;  %v3317_v40 = vld [vmem:[%s4024_s6 + $0x18] sm:$0xff] }
  0x25   : > { %2684 = vmatprep.subr.msk.bf16.mxu0 %vm3161_vm1, %v2682_v21  ;;  %792 = vperm.xlu0 %2881, %v3141_v3   ;;  %v3325_v43 = vld [vmem:[%s4024_s6 + $0x30] sm:$0xff] }
  0x26   : > { %2882 = vset.pattern.permute.xlu1 %v3016_v61 }
  0x27   : > { %808 = vperm.xlu1 %2882, %v3134_v2  }
  0x29   : > { %2884 = vset.pattern.permute.xlu0 %v3016_v61 }
  0x2a   : > { %816 = vperm.xlu0 %2884, %v3141_v3  }
  0x2b   : > { %812 = vperm.xlu1 %2882, %v3146_v4  }
  0x2c   : > { %2687 = vmatpush3.bf16.xpose.msk.msra.mxu0 %vm3161_vm1, %v2685_v26 }
  0x2d   : > { %2690 = vmatprep.subr.msk.bf16.mxu0 %vm3161_vm1, %v2688_v27  ;;  %v589_v27 = vld [vmem:[%s4020_s2] sm:$0xff] }
  0x2e   : > { %2887 = vset.pattern.permute.xlu0 %v3012_v1 }
  0x2f   : > { %2883 = vset.pattern.permute.xlu1 %v3015_v60 }
  0x30   : > { %796 = vperm.xlu1 %2883, %v3152_v5  }
  0x34   : > { %2693 = vmatpush3.bf16.xpose.msk.msra.mxu0 %vm3161_vm1, %v2691_v32  ;;  %2885 = vset.pattern.permute.xlu1 %v3016_v61  ;;  %v3298_v32 = vld [vmem:[%s4024_s6 + $0x8] sm:$0xff] }
  0x35   : > { %2696 = vmatprep.subr.msk.bf16.mxu0 %vm3161_vm1, %v2694_v33  ;;  %820 = vperm.xlu1 %2885, %v3152_v5  }
  0x36   : > { %870 = vperm.xlu0 %2887, %v3298_v32  }
  0x39   : > { %2886 = vset.pattern.permute.xlu1 %v3012_v1 }
  0x3a   : > { %865 = vperm.xlu1 %2886, %v3292_v31   ;;  %885 = vperm.xlu0 %2887, %v3309_v37  }
  0x3c   : > { %2699 = vmatpush3.bf16.xpose.msk.msra.mxu0 %vm3161_vm1, %v2697_v38 }
  0x3d   : > { %2702 = vmatprep.subr.msk.bf16.mxu0 %vm3161_vm1, %v2700_v39 }
  0x3e   : > { %875 = vperm.xlu1 %2886, %v3303_v34   ;;  %895 = vperm.xlu0 %2887, %v3325_v43  }
  0x42   : > { %880 = vperm.xlu1 %2886, %v3317_v40  }
  0x44   : > { %2705 = vmatpush3.bf16.xpose.msk.msra.mxu0 %vm3161_vm1, %v2703_v44 }
  0x45   : > { %2708 = vmatprep.subr.msk.bf16.mxu0 %vm3161_vm1, %v2706_v45 }
  0x4c   : > { %2711 = vmatpush3.bf16.xpose.msk.msra.mxu0 %vm3161_vm1, %v2709_v50 }
  0x4d   : > { %2714 = vmatprep.subr.msk.bf16.mxu0 %vm3161_vm1, %v2712_v51  ;;  %v3341_v51 = vld [vmem:[%s4024_s6 + $0x28] sm:$0xff] }
  0x4e   : > { %890 = vperm.xlu1 %2886, %v3341_v51  }
  0x54   : > { %2717 = vmatpush3.bf16.xpose.msk.msra.mxu0 %vm3161_vm1, %v2715_v54 }
  0x5b   : > { %2663 = vmatmul.mubr.msk.f32.vlgmr.msra.gmra.mrb[0].mxu0 %vm391_vm0, %v3126_v0 }
  0x5c   : > { %2664 = vmatprep.mubr.msk.f32.mxu0 %vm391_vm0, %v336_v55 }
  0x5f   : > { %2665 = vmatmul.mubr.msk.f32.gmra.mrb[2].mxu0 %vm391_vm0, %v336_v55 }
  0x60   : > { %2666 = vmatprep.mubr.msk.f32.mxu0 %vm391_vm0, %v337_v56 }
  0x63   : > { %2667 = vmatmul.mubr.msk.f32.gmra.mrb[4].mxu0 %vm391_vm0, %v337_v56  ;;  %v3353_v56 = vld [vmem:[%s4024_s6 + $0x40] sm:$0xff] }
  0x64   : > { %2668 = vmatprep.mubr.msk.f32.mxu0 %vm391_vm0, %v338_v57  ;;  %905 = vperm.xlu0 %2887, %v3353_v56  }
  0x67   : > { %2669 = vmatmul.mubr.msk.f32.gmra.mrb[6].mxu0 %vm391_vm0, %v338_v57 }
  0x68   : > { %1518 = vmatprep.mubr.f32.mxu0 %v3013_v58 }
  0x8e   : > { %v374_v62 = vpop.permute.xlu0 %373 }
  0x8f   : > { %v384_v12 = vpop.permute.xlu1 %383 }
  0x92   : > { %v379_v6 = vpop.permute.xlu0 %378 }
  0x93   : > { %v389_v18 = vpop.permute.xlu1 %388 }
  0x97   : > { %v595_v33 = vpop.permute.xlu0 %594 }
  0x98   : > { %v599_v36 = vpop.permute.xlu1 %598 }
  0x9c   : > { %v603_v47 = vpop.permute.xlu1 %602 }
 0x12e   : > { %v566_v63 = vpop.f32.mrb[0].mxu0 }
 0x12f   : > { %v568_v0 = vpop.f32.mrb[1].mxu0  ;;  %v567_v8 = vadd.f32 %v566_v63, %v374_v62 }
 0x130   : > { %v569_v11 = vadd.f32 %v568_v0, %v374_v62 }
 0x132   : > { %v572_v7 = vpop.f32.mrb[2].mxu0 }
 0x133   : > { %v573_v9 = vadd.f32 %v572_v7, %v379_v6  ;;  %v574_v10 = vpop.f32.mrb[3].mxu0 }
 0x134   : > { %v575_v13 = vadd.f32 %v574_v10, %v379_v6 }
 0x135   : > { %v2720_v14 = vpack.c.bf16 %v573_v9, %v567_v8  ;;  %v3366_v8 = vld [vmem:[%s4024_s6 + $0x38] sm:$0xff]  ;;  %v607_v9 = vpop.permute.xlu0 %606 }
 0x136   : > { %v578_v15 = vpop.f32.mrb[4].mxu0  ;;  %v2718_v16 = vpack.c.bf16 %v575_v13, %v569_v11  ;;  %v3375_v13 = vld [vmem:[%s4024_s6 + $0x50] sm:$0xff]  ;;  %900 = vperm.xlu1 %2886, %v3366_v8  }
 0x137   : > { %v580_v17 = vpop.f32.mrb[5].mxu0  ;;  %v579_v20 = vadd.f32 %v578_v15, %v384_v12  ;;  %915 = vperm.xlu0 %2887, %v3375_v13  }
 0x138   : > { %2719 = vmatprep.subr.bf16.mxu1 %v2718_v16  ;;  %v581_v23 = vadd.f32 %v580_v17, %v384_v12 }
 0x139   : > { %2721 = vmatpush1.bf16.msra.mxu1 %v2720_v14 }
 0x13a   : > { %v584_v19 = vpop.f32.mrb[6].mxu0 }
 0x13b   : > { %v585_v21 = vadd.f32 %v584_v19, %v389_v18  ;;  %v586_v22 = vpop.f32.mrb[7].mxu0 }
 0x13c   : > { %v587_v24 = vadd.f32 %v586_v22, %v389_v18 }
 0x13d   : > { %v2724_v25 = vpack.c.bf16 %v585_v21, %v579_v20  ;;  %v3388_v21 = vld [vmem:[%s4024_s6 + $0x48] sm:$0xff] }
 0x13e   : > { %v2722_v26 = vpack.c.bf16 %v587_v24, %v581_v23  ;;  %v3397_v24 = vld [vmem:[%s4024_s6 + $0x60] sm:$0xff]  ;;  %910 = vperm.xlu1 %2886, %v3388_v21  }
 0x13f   : > { %925 = vperm.xlu0 %2887, %v3397_v24  }
 0x140   : > { %2723 = vmatprep.subr.bf16.mxu1 %v2722_v26 }
 0x141   : > { %2725 = vmatpush1.bf16.msra.mxu1 %v2724_v25 }
 0x144   : > { %2551 = vmatmul.mubr.msk.f32.vlgmr.msra.gmra.mrb[0].mxu1 %vm609_vm2, %v589_v27 }
 0x145   : > { %692 = vmatprep.mubr.f32.mxu1 %v3013_v58 }
 0x148   : > { %2552 = vmatmul.mubr.msk.f32.gmra.mrb[2].mxu1 %vm609_vm2, %v590_v28 }
 0x149   : > { %698 = vmatprep.mubr.f32.mxu1 %v3013_v58 }
 0x14c   : > { %2553 = vmatmul.mubr.msk.f32.gmra.mrb[4].mxu1 %vm609_vm2, %v591_v29 }
 0x14d   : > { %704 = vmatprep.mubr.f32.mxu1 %v3013_v58 }
 0x150   : > { %2554 = vmatmul.mubr.msk.f32.gmra.mrb[6].mxu1 %vm609_vm2, %v592_v30 }
 0x151   : > { %1055 = vmatprep.mubr.f32.mxu1 %v3013_v58 }
 0x217   : > { %v688_v35 = vpop.f32.mrb[0].mxu1 }
 0x218   : > { %v690_v38 = vpop.f32.mrb[1].mxu1  ;;  %v3312_v39 = vadd.f32 %v688_v35, %v595_v33 }
 0x219   : > { %v3320_v41 = vadd.f32 %v690_v38, %v595_v33  ;;  %v3403_v33 = vld [vmem:[%s4024_s6 + $0x58] sm:$0xff]  ;;  %v3409_v38 = vld [vmem:[%s4024_s6 + $0x70] sm:$0xff] }
 0x21a   : > { %v729_v48 = vmul.f32 %v3312_v39, %v3312_v39  ;;  %920 = vperm.xlu1 %2886, %v3403_v33   ;;  %935 = vperm.xlu0 %2887, %v3409_v38  }
 0x21b   : > { %v694_v42 = vpop.f32.mrb[2].mxu1  ;;  %v730_v52 = vmul.f32 %v3320_v41, %v3320_v41 }
 0x21c   : > { %v3327_v44 = vadd.f32 %v694_v42, %v599_v36  ;;  %v696_v45 = vpop.f32.mrb[3].mxu1 }
 0x21d   : > { %v3329_v46 = vadd.f32 %v696_v45, %v599_v36 }
 0x21e   : > { %v711_v49 = vadd.f32 %v3327_v44, %v3312_v39  ;;  %v731_v50 = vmul.f32 %v3327_v44, %v3327_v44 }
 0x21f   : > { %v720_v53 = vadd.f32 %v3329_v46, %v3320_v41  ;;  %v732_v54 = vmul.f32 %v3329_v46, %v3329_v46  ;;  %v700_v55 = vpop.f32.mrb[4].mxu1 }
 0x220   : > { %v737_v57 = vadd.f32 %v731_v50, %v729_v48  ;;  %v3355_v61 = vadd.f32 %v700_v55, %v603_v47  ;;  %v702_v62 = vpop.f32.mrb[5].mxu1 }
 0x221   : > { %v746_v63 = vadd.f32 %v732_v54, %v730_v52  ;;  %v3357_v0 = vadd.f32 %v702_v62, %v603_v47  ;;  %v3415_v52 = vld [vmem:[%s4024_s6 + $0x68] sm:$0xff] }
 0x222   : > { %v712_v6 = vadd.f32 %v711_v49, %v3355_v61  ;;  %v733_v7 = vmul.f32 %v3355_v61, %v3355_v61  ;;  %930 = vperm.xlu1 %2886, %v3415_v52  }
 0x223   : > { %v721_v10 = vadd.f32 %v720_v53, %v3357_v0  ;;  %v734_v11 = vmul.f32 %v3357_v0, %v3357_v0  ;;  %v706_v12 = vpop.f32.mrb[6].mxu1 }
 0x224   : > { %v738_v14 = vadd.f32 %v737_v57, %v733_v7  ;;  %v3377_v15 = vadd.f32 %v706_v12, %v607_v9  ;;  %v708_v16 = vpop.f32.mrb[7].mxu1 }
 0x225   : > { %v747_v17 = vadd.f32 %v746_v63, %v734_v11  ;;  %v3379_v18 = vadd.f32 %v708_v16, %v607_v9 }
 0x226   : > { %v713_v19 = vadd.f32 %v712_v6, %v3377_v15  ;;  %v735_v20 = vmul.f32 %v3377_v15, %v3377_v15  ;;  %v785_v6 = vpop.permute.xlu1 %784 }
 0x227   : > { %v722_v22 = vadd.f32 %v721_v10, %v3379_v18  ;;  %v736_v23 = vmul.f32 %v3379_v18, %v3379_v18  ;;  %v3422_v10 = vld [vmem:[%s4024_s6 + $0x78] sm:$0xff] }
 0x228   : > { %v714_v25 = vrot.slane %v713_v19, 4  ;;  %v739_v26 = vadd.f32 %v738_v14, %v735_v20  ;;  %940 = vperm.xlu1 %2886, %v3422_v10  }
 0x229   : > { %v723_v27 = vrot.slane %v722_v22, 4  ;;  %v748_v28 = vadd.f32 %v747_v17, %v736_v23 }
 0x22a   : > { %v715_v29 = vadd.f32 %v714_v25, %v713_v19  ;;  %v740_v30 = vrot.slane %v739_v26, 4 }
 0x22b   : > { %v724_v35 = vadd.f32 %v723_v27, %v722_v22  ;;  %v749_v36 = vrot.slane %v748_v28, 4 }
 0x22c   : > { %v716_v42 = vrot.slane %v715_v29, 2  ;;  %v741_v45 = vadd.f32 %v740_v30, %v739_v26  ;;  %v809_v30 = vpop.permute.xlu1 %808 }
 0x22d   : > { %v725_v47 = vrot.slane %v724_v35, 2  ;;  %v750_v48 = vadd.f32 %v749_v36, %v748_v28 }
 0x22e   : > { %v717_v49 = vadd.f32 %v716_v42, %v715_v29  ;;  %v742_v50 = vrot.slane %v741_v45, 2 }
 0x22f   : > { %v726_v53 = vadd.f32 %v725_v47, %v724_v35  ;;  %v751_v54 = vrot.slane %v750_v48, 2 }
 0x230   : > { %v718_v55 = vrot.slane %v717_v49, 1  ;;  %v743_v57 = vadd.f32 %v742_v50, %v741_v45  ;;  %v789_v50 = vpop.permute.xlu0 %788 }
 0x231   : > { %v727_v62 = vrot.slane %v726_v53, 1  ;;  %v752_v63 = vadd.f32 %v751_v54, %v750_v48 }
 0x232   : > { %v719_v7 = vadd.f32 %v718_v55, %v717_v49  ;;  %v744_v9 = vrot.slane %v743_v57, 1 }
 0x233   : > { %v728_v11 = vadd.f32 %v727_v62, %v726_v53  ;;  %v753_v12 = vrot.slane %v752_v63, 1 }
 0x234   : > { %v745_v14 = vadd.f32 %v744_v9, %v743_v57  ;;  %v755_v16 = vmul.f32 0.03125, %v719_v7  ;;  %v793_v53 = vpop.permute.xlu0 %792 }
 0x235   : > { %v754_v17 = vadd.f32 %v753_v12, %v752_v63  ;;  %v756_v19 = vmul.f32 0.03125, %v728_v11 }
 0x236   : > { %v757_v20 = vmul.f32 0.03125, %v745_v14  ;;  %v759_v22 = vmul.f32 %v755_v16, %v755_v16  ;;  %v769_v23 = vsub.f32 %v3377_v15, %v755_v16  ;;  %v763_v25 = vsub.f32 %v3312_v39, %v755_v16  ;;  %v813_v39 = vpop.permute.xlu1 %812 }
 0x237   : > { %v758_v26 = vmul.f32 0.03125, %v754_v17  ;;  %v760_v27 = vmul.f32 %v756_v19, %v756_v19  ;;  %v770_v28 = vsub.f32 %v3379_v18, %v756_v19  ;;  %v764_v29 = vsub.f32 %v3320_v41, %v756_v19 }
 0x238   : > { %v761_v35 = vsub.f32 %v757_v20, %v759_v22  ;;  %v765_v36 = vsub.f32 %v3327_v44, %v755_v16  ;;  %v766_v42 = vsub.f32 %v3329_v46, %v756_v19  ;;  %v767_v45 = vsub.f32 %v3355_v61, %v755_v16  ;;  %v817_v12 = vpop.permute.xlu0 %816 }
 0x239   : > { %v762_v47 = vsub.f32 %v758_v26, %v760_v27  ;;  %v768_v48 = vsub.f32 %v3357_v0, %v756_v19 }
 0x23a   : > { %v771_v15 = vadd.f32 1e-05, %v761_v35  ;;  %v797_v18 = vpop.permute.xlu1 %796 }
 0x23b   : > { %v772_v49 = vadd.f32 1e-05, %v762_v47  ;;  %v831_v47 = vld [vmem:[%s4020_s2 + $0x20] sm:$0xff] }
 0x23c   : > { %2920 = vrsqrt.f32 %v771_v15  ;;  %v833_v15 = vld [vmem:[%s4020_s2 + $0x30] sm:$0xff] }
 0x23d   : > { %2922 = vrsqrt.f32 %v772_v49  ;;  %v834_v49 = vld [vmem:[%s4020_s2 + $0x38] sm:$0xff] }
 0x23e   : > { %v821_v11 = vpop.permute.xlu1 %820 }
 0x246   : > { %v2921_v41 = vpop.eup %2920 }
 0x247   : > { %v2923_v54 = vpop.eup %2922  ;;  %v775_v55 = vmul.f32 %v2921_v41, %v763_v25  ;;  %v777_v57 = vmul.f32 %v2921_v41, %v765_v36  ;;  %v781_v44 = vmul.f32 %v2921_v41, %v769_v23  ;;  %v779_v62 = vmul.f32 %v2921_v41, %v767_v45  ;;  %v839_v41 = vld [vmem:[%s4020_s2 + $0x60] sm:$0xff] }
 0x248   : > { %v776_v46 = vmul.f32 %v2923_v54, %v764_v29  ;;  %v778_v63 = vmul.f32 %v2923_v54, %v766_v42  ;;  %v782_v61 = vmul.f32 %v2923_v54, %v770_v28  ;;  %v780_v7 = vmul.f32 %v2923_v54, %v768_v48  ;;  %v832_v48 = vld [vmem:[%s4020_s2 + $0x28] sm:$0xff] }
 0x249   : > { %v799_v9 = vmul.f32 %v785_v6, %v775_v55  ;;  %v801_v0 = vmul.f32 %v789_v50, %v777_v57  ;;  %v805_v25 = vmul.f32 %v797_v18, %v781_v44  ;;  %v803_v26 = vmul.f32 %v793_v53, %v779_v62  ;;  %v840_v54 = vld [vmem:[%s4020_s2 + $0x68] sm:$0xff]  ;;  %v841_v55 = vld [vmem:[%s4020_s2 + $0x70] sm:$0xff]  ;;  %v842_v57 = vld [vmem:[%s4020_s2 + $0x78] sm:$0xff] }
 0x24a   : > { %v800_v14 = vmul.f32 %v785_v6, %v776_v46  ;;  %v802_v16 = vmul.f32 %v789_v50, %v778_v63  ;;  %v806_v17 = vmul.f32 %v797_v18, %v782_v61  ;;  %v804_v19 = vmul.f32 %v793_v53, %v780_v7  ;;  %v836_v50 = vld [vmem:[%s4020_s2 + $0x48] sm:$0xff]  ;;  %v837_v18 = vld [vmem:[%s4020_s2 + $0x50] sm:$0xff]  ;;  %v838_v53 = vld [vmem:[%s4020_s2 + $0x58] sm:$0xff] }
 0x24b   : > { %v3433_v20 = vadd.f32 %v809_v30, %v799_v9  ;;  %v3435_v22 = vadd.f32 %v813_v39, %v801_v0  ;;  %v3449_v36 = vadd.f32 %v821_v11, %v805_v25  ;;  %v3451_v42 = vadd.f32 %v817_v12, %v803_v26  ;;  %v843_v44 = vld [vmem:[%s4020_s2 + $0x80] sm:$0xff]  ;;  %v844_v62 = vld [vmem:[%s4020_s2 + $0x88] sm:$0xff]  ;;  %v845_v46 = vld [vmem:[%s4020_s2 + $0x90] sm:$0xff]  ;;  %v866_v0 = vpop.permute.xlu1 %865 }
 0x24c   : > { %v3437_v23 = vadd.f32 %v809_v30, %v800_v14  ;;  %v3439_v27 = vadd.f32 %v813_v39, %v802_v16  ;;  %v3441_v28 = vadd.f32 %v821_v11, %v806_v17  ;;  %v3443_v29 = vadd.f32 %v817_v12, %v804_v19  ;;  %v835_v39 = vld [vmem:[%s4020_s2 + $0x40] sm:$0xff]  ;;  %v846_v63 = vld [vmem:[%s4020_s2 + $0x98] sm:$0xff]  ;;  %v871_v14 = vpop.permute.xlu0 %870 }
 0x24d   : > { %v2728_v35 = vpack.c.bf16 %v3435_v22, %v3433_v20  ;;  %v2732_v45 = vpack.c.bf16 %v3449_v36, %v3451_v42  ;;  %v3017_v61 = vmov 4   ;;  %v3018_v7 = vmov 5  }
 0x24e   : > { %v2726_v6 = vpack.c.bf16 %v3439_v27, %v3437_v23  ;;  %v2730_v30 = vpack.c.bf16 %v3441_v28, %v3443_v29  ;;  %2888 = vset.pattern.permute.xlu0 %v3017_v61  ;;  %2889 = vset.pattern.permute.xlu1 %v3017_v61  ;;  %v3019_v9 = vmov 6  }
 0x24f   : > { %1189 = vperm.xlu0 %2888, %v3134_v2   ;;  %1193 = vperm.xlu1 %2889, %v3146_v4   ;;  %v876_v26 = vpop.permute.xlu1 %875 }
 0x250   : > { %2727 = vmatprep.subr.bf16.mxu1 %v2726_v6  ;;  %v886_v61 = vpop.permute.xlu0 %885 }
 0x251   : > { %2729 = vmatpush1.bf16.msra.mxu1 %v2728_v35 }
 0x252   : > { %2731 = vmatprep.subr.bf16.mxu1 %v2730_v30 }
 0x253   : > { %1197 = vperm.xlu1 %2889, %v3141_v3   ;;  %1201 = vperm.xlu0 %2888, %v3152_v5  }
 0x255   : > { %2733 = vmatpush1.bf16.msra.mxu1 %v2732_v45 }
 0x257   : > { %2890 = vset.pattern.permute.xlu1 %v3018_v7  ;;  %2891 = vset.pattern.permute.xlu0 %v3018_v7 }
 0x258   : > { %2555 = vmatmul.mubr.msk.f32.vlgmr.msra.gmra.mrb[8].mxu1 %vm609_vm2, %v831_v47  ;;  %1374 = vperm.xlu1 %2890, %v3134_v2  }
 0x259   : > { %1061 = vmatprep.mubr.f32.mxu1 %v3013_v58  ;;  %1378 = vperm.xlu0 %2891, %v3146_v4  }
 0x25c   : > { %2556 = vmatmul.mubr.msk.f32.gmra.mrb[10].mxu1 %vm609_vm2, %v832_v48  ;;  %2892 = vset.pattern.permute.xlu1 %v3019_v9 }
 0x25d   : > { %1067 = vmatprep.mubr.f32.mxu1 %v3013_v58  ;;  %1382 = vperm.xlu0 %2891, %v3141_v3  }
 0x25e   : > { %1398 = vperm.xlu1 %2892, %v3134_v2  }
 0x260   : > { %2557 = vmatmul.mubr.msk.f32.gmra.mrb[12].mxu1 %vm609_vm2, %v833_v15 }
 0x261   : > { %1073 = vmatprep.mubr.f32.mxu1 %v3013_v58  ;;  %2894 = vset.pattern.permute.xlu0 %v3019_v9 }
 0x262   : > { %1402 = vperm.xlu1 %2892, %v3146_v4   ;;  %1406 = vperm.xlu0 %2894, %v3141_v3  }
 0x264   : > { %2558 = vmatmul.mubr.msk.f32.gmra.mrb[14].mxu1 %vm609_vm2, %v834_v49  ;;  %v881_v49 = vpop.permute.xlu1 %880 }
 0x265   : > { %1079 = vmatprep.mubr.f32.mxu1 %v3013_v58 }
 0x266   : > { %2893 = vset.pattern.permute.xlu1 %v3018_v7 }
 0x267   : > { %1386 = vperm.xlu1 %2893, %v3152_v5  }
 0x268   : > { %2559 = vmatmul.mubr.msk.f32.gmra.mrb[16].mxu1 %vm609_vm2, %v835_v39 }
 0x269   : > { %1085 = vmatprep.mubr.f32.mxu1 %v3013_v58 }
 0x26b   : > { %2895 = vset.pattern.permute.xlu1 %v3019_v9 }
 0x26c   : > { %2560 = vmatmul.mubr.msk.f32.gmra.mrb[18].mxu1 %vm609_vm2, %v836_v50  ;;  %1410 = vperm.xlu1 %2895, %v3152_v5  }
 0x26d   : > { %1091 = vmatprep.mubr.f32.mxu1 %v3013_v58 }
 0x270   : > { %2561 = vmatmul.mubr.msk.f32.gmra.mrb[20].mxu1 %vm609_vm2, %v837_v18 }
 0x271   : > { %1097 = vmatprep.mubr.f32.mxu1 %v3013_v58 }
 0x274   : > { %2562 = vmatmul.mubr.msk.f32.gmra.mrb[22].mxu1 %vm609_vm2, %v838_v53 }
 0x275   : > { %1103 = vmatprep.mubr.f32.mxu1 %v3013_v58 }
 0x278   : > { %2563 = vmatmul.mubr.msk.f32.gmra.mrb[24].mxu1 %vm609_vm2, %v839_v41 }
 0x279   : > { %1109 = vmatprep.mubr.f32.mxu1 %v3013_v58 }
 0x27c   : > { %2564 = vmatmul.mubr.msk.f32.gmra.mrb[26].mxu1 %vm609_vm2, %v840_v54 }
 0x27d   : > { %1115 = vmatprep.mubr.f32.mxu1 %v3013_v58 }
 0x280   : > { %2565 = vmatmul.mubr.msk.f32.gmra.mrb[28].mxu1 %vm609_vm2, %v841_v55 }
 0x281   : > { %1121 = vmatprep.mubr.f32.mxu1 %v3013_v58 }
 0x284   : > { %2566 = vmatmul.mubr.msk.f32.gmra.mrb[30].mxu1 %vm609_vm2, %v842_v57 }
 0x285   : > { %1127 = vmatprep.mubr.f32.mxu1 %v3013_v58 }
 0x288   : > { %2567 = vmatmul.mubr.msk.f32.gmra.mrb[32].mxu1 %vm609_vm2, %v843_v44 }
 0x289   : > { %1133 = vmatprep.mubr.f32.mxu1 %v3013_v58 }
 0x28c   : > { %2568 = vmatmul.mubr.msk.f32.gmra.mrb[34].mxu1 %vm609_vm2, %v844_v62 }
 0x28d   : > { %1139 = vmatprep.mubr.f32.mxu1 %v3013_v58 }
 0x290   : > { %2569 = vmatmul.mubr.msk.f32.gmra.mrb[36].mxu1 %vm609_vm2, %v845_v46 }
 0x291   : > { %1145 = vmatprep.mubr.f32.mxu1 %v3013_v58 }
 0x294   : > { %2570 = vmatmul.mubr.msk.f32.gmra.mrb[38].mxu1 %vm609_vm2, %v846_v63 }
 0x295   : > { %1268 = vmatprep.mubr.f32.mxu1 %v3013_v58 }
 0x32b   : > { %v1057_v11 = vpop.f32.mrb[8].mxu1 }
 0x32c   : > { %v1059_v12 = vpop.f32.mrb[9].mxu1  ;;  %v1058_v16 = vadd.f32 %v1057_v11, %v866_v0 }
 0x32d   : > { %v1060_v17 = vadd.f32 %v1059_v12, %v866_v0  ;;  %v891_v0 = vpop.permute.xlu1 %890 }
 0x32e   : > { %v1152_v4 = vmax.f32 %v1058_v16, 0.0 }
 0x32f   : > { %v1063_v19 = vpop.f32.mrb[10].mxu1  ;;  %v1153_v3 = vmax.f32 %v1060_v17, 0.0 }
 0x330   : > { %v1064_v25 = vadd.f32 %v1063_v19, %v871_v14  ;;  %v1065_v2 = vpop.f32.mrb[11].mxu1 }
 0x331   : > { %v1066_v6 = vadd.f32 %v1065_v2, %v871_v14 }
 0x332   : > { %v1154_v35 = vmax.f32 %v1064_v25, 0.0 }
 0x333   : > { %v1155_v30 = vmax.f32 %v1066_v6, 0.0  ;;  %v1069_v45 = vpop.f32.mrb[12].mxu1 }
 0x334   : > { %v2736_v47 = vpack.c.bf16 %v1154_v35, %v1152_v4  ;;  %v1071_v48 = vpop.f32.mrb[13].mxu1  ;;  %v1070_v5 = vadd.f32 %v1069_v45, %v876_v26 }
 0x335   : > { %v2734_v15 = vpack.c.bf16 %v1155_v30, %v1153_v3  ;;  %v1072_v39 = vadd.f32 %v1071_v48, %v876_v26  ;;  %v896_v3 = vpop.permute.xlu0 %895 }
 0x336   : > { %v1156_v54 = vmax.f32 %v1070_v5, 0.0 }
 0x337   : > { %v1075_v50 = vpop.f32.mrb[14].mxu1  ;;  %2735 = vmatprep.subr.bf16.mxu1 %v2734_v15  ;;  %v1157_v57 = vmax.f32 %v1072_v39, 0.0 }
 0x338   : > { %v1076_v18 = vadd.f32 %v1075_v50, %v881_v49  ;;  %v1077_v53 = vpop.f32.mrb[15].mxu1  ;;  %2737 = vmatpush1.bf16.msra.mxu1 %v2736_v47  ;;  %v901_v47 = vpop.permute.xlu1 %900 }
 0x339   : > { %v1078_v41 = vadd.f32 %v1077_v53, %v881_v49 }
 0x33a   : > { %v1158_v55 = vmax.f32 %v1076_v18, 0.0 }
 0x33b   : > { %v1159_v44 = vmax.f32 %v1078_v41, 0.0  ;;  %v1081_v62 = vpop.f32.mrb[16].mxu1 }
 0x33c   : > { %v2740_v46 = vpack.c.bf16 %v1158_v55, %v1156_v54  ;;  %v1083_v63 = vpop.f32.mrb[17].mxu1  ;;  %v1082_v9 = vadd.f32 %v1081_v62, %v886_v61 }
 0x33d   : > { %v2738_v7 = vpack.c.bf16 %v1159_v44, %v1157_v57  ;;  %v1084_v11 = vadd.f32 %v1083_v63, %v886_v61  ;;  %v906_v44 = vpop.permute.xlu0 %905  ;;  %v911_v63 = vpop.permute.xlu1 %910 }
 0x33e   : > { %v1160_v19 = vmax.f32 %v1082_v9, 0.0 }
 0x33f   : > { %v1087_v12 = vpop.f32.mrb[18].mxu1  ;;  %2739 = vmatprep.subr.bf16.mxu1 %v2738_v7  ;;  %v1161_v2 = vmax.f32 %v1084_v11, 0.0 }
 0x340   : > { %v1088_v14 = vadd.f32 %v1087_v12, %v891_v0  ;;  %v1089_v16 = vpop.f32.mrb[19].mxu1  ;;  %2741 = vmatpush1.bf16.msra.mxu1 %v2740_v46 }
 0x341   : > { %v1090_v17 = vadd.f32 %v1089_v16, %v891_v0 }
 0x342   : > { %v1162_v25 = vmax.f32 %v1088_v14, 0.0 }
 0x343   : > { %v1163_v26 = vmax.f32 %v1090_v17, 0.0  ;;  %v1093_v6 = vpop.f32.mrb[20].mxu1 }
 0x344   : > { %v2744_v4 = vpack.c.bf16 %v1162_v25, %v1160_v19  ;;  %v1095_v35 = vpop.f32.mrb[21].mxu1  ;;  %v1094_v45 = vadd.f32 %v1093_v6, %v896_v3 }
 0x345   : > { %v2742_v30 = vpack.c.bf16 %v1163_v26, %v1161_v2  ;;  %v1096_v48 = vadd.f32 %v1095_v35, %v896_v3  ;;  %v916_v26 = vpop.permute.xlu0 %915  ;;  %v921_v35 = vpop.permute.xlu1 %920 }
 0x346   : > { %v1164_v50 = vmax.f32 %v1094_v45, 0.0 }
 0x347   : > { %v1099_v15 = vpop.f32.mrb[22].mxu1  ;;  %2743 = vmatprep.subr.bf16.mxu1 %v2742_v30  ;;  %v1165_v53 = vmax.f32 %v1096_v48, 0.0 }
 0x348   : > { %v1100_v5 = vadd.f32 %v1099_v15, %v901_v47  ;;  %v1101_v49 = vpop.f32.mrb[23].mxu1  ;;  %2745 = vmatpush1.bf16.msra.mxu1 %v2744_v4 }
 0x349   : > { %v1102_v39 = vadd.f32 %v1101_v49, %v901_v47 }
 0x34a   : > { %v1166_v18 = vmax.f32 %v1100_v5, 0.0 }
 0x34b   : > { %v1167_v41 = vmax.f32 %v1102_v39, 0.0  ;;  %v1105_v54 = vpop.f32.mrb[24].mxu1 }
 0x34c   : > { %v2748_v55 = vpack.c.bf16 %v1166_v18, %v1164_v50  ;;  %v1107_v57 = vpop.f32.mrb[25].mxu1  ;;  %v1106_v46 = vadd.f32 %v1105_v54, %v906_v44 }
 0x34d   : > { %v2746_v62 = vpack.c.bf16 %v1167_v41, %v1165_v53  ;;  %v1108_v61 = vadd.f32 %v1107_v57, %v906_v44  ;;  %v926_v41 = vpop.permute.xlu0 %925  ;;  %v931_v57 = vpop.permute.xlu1 %930 }
 0x34e   : > { %v1168_v12 = vmax.f32 %v1106_v46, 0.0 }
 0x34f   : > { %v1111_v7 = vpop.f32.mrb[26].mxu1  ;;  %2747 = vmatprep.subr.bf16.mxu1 %v2746_v62  ;;  %v1169_v16 = vmax.f32 %v1108_v61, 0.0 }
 0x350   : > { %v1112_v9 = vadd.f32 %v1111_v7, %v911_v63  ;;  %v1113_v0 = vpop.f32.mrb[27].mxu1  ;;  %2749 = vmatpush1.bf16.msra.mxu1 %v2748_v55 }
 0x351   : > { %v1114_v11 = vadd.f32 %v1113_v0, %v911_v63 }
 0x352   : > { %v1170_v14 = vmax.f32 %v1112_v9, 0.0 }
 0x353   : > { %v1171_v17 = vmax.f32 %v1114_v11, 0.0  ;;  %v1117_v19 = vpop.f32.mrb[28].mxu1 }
 0x354   : > { %v2752_v25 = vpack.c.bf16 %v1170_v14, %v1168_v12  ;;  %v1119_v2 = vpop.f32.mrb[29].mxu1  ;;  %v1118_v4 = vadd.f32 %v1117_v19, %v916_v26 }
 0x355   : > { %v2750_v6 = vpack.c.bf16 %v1171_v17, %v1169_v16  ;;  %v1120_v3 = vadd.f32 %v1119_v2, %v916_v26  ;;  %v936_v17 = vpop.permute.xlu0 %935  ;;  %v941_v2 = vpop.permute.xlu1 %940 }
 0x356   : > { %v1172_v15 = vmax.f32 %v1118_v4, 0.0 }
 0x357   : > { %v1123_v30 = vpop.f32.mrb[30].mxu1  ;;  %2751 = vmatprep.subr.bf16.mxu1 %v2750_v6  ;;  %v1173_v49 = vmax.f32 %v1120_v3, 0.0 }
 0x358   : > { %v1124_v45 = vadd.f32 %v1123_v30, %v921_v35  ;;  %v1125_v47 = vpop.f32.mrb[31].mxu1  ;;  %2753 = vmatpush1.bf16.msra.mxu1 %v2752_v25 }
 0x359   : > { %v1126_v48 = vadd.f32 %v1125_v47, %v921_v35 }
 0x35a   : > { %v1174_v5 = vmax.f32 %v1124_v45, 0.0 }
 0x35b   : > { %v1175_v39 = vmax.f32 %v1126_v48, 0.0  ;;  %v1129_v50 = vpop.f32.mrb[32].mxu1 }
 0x35c   : > { %v2756_v18 = vpack.c.bf16 %v1174_v5, %v1172_v15  ;;  %v1131_v53 = vpop.f32.mrb[33].mxu1  ;;  %v1130_v55 = vadd.f32 %v1129_v50, %v926_v41  ;;  %v1186_v50 = vld [vmem:[%s4021_s3 + $0x10] sm:$0xff] }
 0x35d   : > { %v2754_v54 = vpack.c.bf16 %v1175_v39, %v1173_v49  ;;  %v1132_v44 = vadd.f32 %v1131_v53, %v926_v41  ;;  %v1184_v49 = vld [vmem:[%s4021_s3] sm:$0xff]  ;;  %v1185_v39 = vld [vmem:[%s4021_s3 + $0x8] sm:$0xff]  ;;  %v3020_v53 = vmov 7  }
 0x35e   : > { %v1176_v7 = vmax.f32 %v1130_v55, 0.0  ;;  %2896 = vset.pattern.permute.xlu1 %v3020_v53  ;;  %2897 = vset.pattern.permute.xlu0 %v3020_v53  ;;  %v3568_v41 = vld [vmem:[%s4023_s5] sm:$0xff]  ;;  %v3580_v55 = vld [vmem:[%s4023_s5 + $0x10] sm:$0xff] }
 0x35f   : > { %v1135_v62 = vpop.f32.mrb[34].mxu1  ;;  %2755 = vmatprep.subr.bf16.mxu1 %v2754_v54  ;;  %v1177_v0 = vmax.f32 %v1132_v44, 0.0  ;;  %1427 = vperm.xlu1 %2896, %v3568_v41   ;;  %v3574_v54 = vld [vmem:[%s4023_s5 + $0x8] sm:$0xff]  ;;  %v3587_v44 = vld [vmem:[%s4023_s5 + $0x18] sm:$0xff] }
 0x360   : > { %v1136_v46 = vadd.f32 %v1135_v62, %v931_v57  ;;  %v1137_v63 = vpop.f32.mrb[35].mxu1  ;;  %2757 = vmatpush1.bf16.msra.mxu1 %v2756_v18  ;;  %v1187_v18 = vld [vmem:[%s4021_s3 + $0x18] sm:$0xff]  ;;  %1431 = vperm.xlu0 %2897, %v3574_v54   ;;  %v3022_v62 = vmov 9  }
 0x361   : > { %v1138_v61 = vadd.f32 %v1137_v63, %v931_v57  ;;  %v3021_v57 = vmov 8  }
 0x362   : > { %v1178_v9 = vmax.f32 %v1136_v46, 0.0 }
 0x363   : > { %v1179_v11 = vmax.f32 %v1138_v61, 0.0  ;;  %v1141_v12 = vpop.f32.mrb[36].mxu1  ;;  %1435 = vperm.xlu1 %2896, %v3580_v55  }
 0x364   : > { %v2760_v14 = vpack.c.bf16 %v1178_v9, %v1176_v7  ;;  %v1143_v16 = vpop.f32.mrb[37].mxu1  ;;  %v1142_v25 = vadd.f32 %v1141_v12, %v936_v17  ;;  %2898 = vset.pattern.permute.xlu0 %v3021_v57 }
 0x365   : > { %v2758_v19 = vpack.c.bf16 %v1179_v11, %v1177_v0  ;;  %v1144_v26 = vadd.f32 %v1143_v16, %v936_v17  ;;  %1616 = vperm.xlu0 %2898, %v3568_v41  }
 0x366   : > { %v1180_v30 = vmax.f32 %v1142_v25, 0.0 }
 0x367   : > { %v1147_v6 = vpop.f32.mrb[38].mxu1  ;;  %2759 = vmatprep.subr.bf16.mxu1 %v2758_v19  ;;  %v1181_v47 = vmax.f32 %v1144_v26, 0.0  ;;  %1439 = vperm.xlu1 %2896, %v3587_v44  }
 0x368   : > { %v1148_v4 = vadd.f32 %v1147_v6, %v941_v2  ;;  %v1149_v35 = vpop.f32.mrb[39].mxu1  ;;  %2761 = vmatpush1.bf16.msra.mxu1 %v2760_v14 }
 0x369   : > { %v1150_v3 = vadd.f32 %v1149_v35, %v941_v2  ;;  %2901 = vset.pattern.permute.xlu0 %v3022_v62 }
 0x36a   : > { %v1182_v45 = vmax.f32 %v1148_v4, 0.0  ;;  %1644 = vperm.xlu0 %2901, %v3574_v54  }
 0x36b   : > { %v1183_v48 = vmax.f32 %v1150_v3, 0.0  ;;  %2899 = vset.pattern.permute.xlu1 %v3021_v57 }
 0x36c   : > { %v2764_v15 = vpack.c.bf16 %v1182_v45, %v1180_v30  ;;  %1620 = vperm.xlu1 %2899, %v3574_v54  }
 0x36d   : > { %v2762_v5 = vpack.c.bf16 %v1183_v48, %v1181_v47 }
 0x36e   : > { %1648 = vperm.xlu0 %2901, %v3580_v55  }
 0x36f   : > { %2763 = vmatprep.subr.bf16.mxu1 %v2762_v5 }
 0x370   : > { %2765 = vmatpush1.bf16.msra.mxu1 %v2764_v15  ;;  %2900 = vset.pattern.permute.xlu1 %v3022_v62 }
 0x371   : > { %1640 = vperm.xlu1 %2900, %v3568_v41  }
 0x372   : > { %2904 = vset.pattern.permute.xlu0 %v3014_v59 }
 0x373   : > { %1269 = vmatmul.mubr.f32.vlgmr.msra.gmra.mrb[40].mxu1 %v1184_v49  ;;  %1680 = vperm.xlu0 %2904, %v3292_v31   ;;  %v1190_v31 = vpop.permute.xlu0 %1189 }
 0x374   : > { %1274 = vmatprep.mubr.f32.mxu1 %v3013_v58 }
 0x375   : > { %2902 = vset.pattern.permute.xlu1 %v3021_v57 }
 0x376   : > { %1624 = vperm.xlu1 %2902, %v3580_v55  }
 0x377   : > { %1275 = vmatmul.mubr.f32.gmra.mrb[42].mxu1 %v1185_v39  ;;  %1692 = vperm.xlu0 %2904, %v3317_v40   ;;  %v1202_v19 = vpop.permute.xlu0 %1201 }
 0x378   : > { %1280 = vmatprep.mubr.f32.mxu1 %v3013_v58 }
 0x37a   : > { %1628 = vperm.xlu1 %2902, %v3587_v44  }
 0x37b   : > { %1281 = vmatmul.mubr.f32.gmra.mrb[44].mxu1 %v1186_v50  ;;  %1700 = vperm.xlu0 %2904, %v3341_v51   ;;  %v1194_v51 = vpop.permute.xlu1 %1193 }
 0x37c   : > { %1286 = vmatprep.mubr.f32.mxu1 %v3013_v58 }
 0x37e   : > { %2903 = vset.pattern.permute.xlu1 %v3022_v62 }
 0x37f   : > { %1287 = vmatmul.mubr.f32.gmra.mrb[46].mxu1 %v1187_v18  ;;  %1708 = vperm.xlu0 %2904, %v3366_v8  }
 0x380   : > { %2069 = vmatprep.mubr.f32.mxu1 %v3013_v58  ;;  %1652 = vperm.xlu1 %2903, %v3587_v44  }
 0x383   : > { %1716 = vperm.xlu0 %2904, %v3388_v21  }
 0x384   : > { %2905 = vset.pattern.permute.xlu1 %v3014_v59 }
 0x385   : > { %1684 = vperm.xlu1 %2905, %v3298_v32  }
 0x387   : > { %1724 = vperm.xlu0 %2904, %v3403_v33  }
 0x389   : > { %1688 = vperm.xlu1 %2905, %v3303_v34  }
 0x38b   : > { %1732 = vperm.xlu0 %2904, %v3415_v52  }
 0x38d   : > { %1696 = vperm.xlu1 %2905, %v3309_v37   ;;  %v1198_v37 = vpop.permute.xlu1 %1197 }
 0x38f   : > { %1740 = vperm.xlu0 %2904, %v3422_v10  }
 0x391   : > { %1704 = vperm.xlu1 %2905, %v3325_v43  }
 0x395   : > { %1712 = vperm.xlu1 %2905, %v3353_v56  }
 0x399   : > { %1720 = vperm.xlu1 %2905, %v3375_v13  }
 0x39d   : > { %1728 = vperm.xlu1 %2905, %v3397_v24  }
 0x3a1   : > { %1736 = vperm.xlu1 %2905, %v3409_v38  }
 0x446   : > { %v1270_v40 = vpop.f32.mrb[40].mxu1 }
 0x447   : > { %v1271_v8 = vadd.f32 %v1270_v40, %v1190_v31  ;;  %v1272_v46 = vpop.f32.mrb[41].mxu1 }
 0x448   : > { %v1273_v21 = vadd.f32 %v1272_v46, %v1190_v31 }
 0x449   : > { %v3612_v32 = vadd.f32 %v1271_v8, %v3433_v20 }
 0x44a   : > { %v1276_v63 = vpop.f32.mrb[42].mxu1  ;;  %v3615_v52 = vadd.f32 %v1273_v21, %v3437_v23 }
 0x44b   : > { %v1277_v33 = vadd.f32 %v1276_v63, %v1194_v51  ;;  %v1278_v34 = vpop.f32.mrb[43].mxu1  ;;  %v1319_v20 = vmul.f32 %v3612_v32, %v3612_v32 }
 0x44c   : > { %v1279_v61 = vadd.f32 %v1278_v34, %v1194_v51  ;;  %v1320_v56 = vmul.f32 %v3615_v52, %v3615_v52 }
 0x44d   : > { %v3619_v10 = vadd.f32 %v1277_v33, %v3435_v22 }
 0x44e   : > { %v3622_v7 = vadd.f32 %v1279_v61, %v3439_v27  ;;  %v1282_v43 = vpop.f32.mrb[44].mxu1  ;;  %v1375_v61 = vpop.permute.xlu1 %1374 }
 0x44f   : > { %v1301_v9 = vadd.f32 %v3619_v10, %v3612_v32  ;;  %v1321_v23 = vmul.f32 %v3619_v10, %v3619_v10  ;;  %v1283_v0 = vadd.f32 %v1282_v43, %v1198_v37  ;;  %v1284_v11 = vpop.f32.mrb[45].mxu1 }
 0x450   : > { %v1310_v22 = vadd.f32 %v3622_v7, %v3615_v52  ;;  %v1322_v27 = vmul.f32 %v3622_v7, %v3622_v7  ;;  %v1285_v12 = vadd.f32 %v1284_v11, %v1198_v37 }
 0x451   : > { %v1327_v14 = vadd.f32 %v1321_v23, %v1319_v20  ;;  %v3638_v16 = vadd.f32 %v1283_v0, %v3451_v42 }
 0x452   : > { %v1336_v17 = vadd.f32 %v1322_v27, %v1320_v56  ;;  %v3641_v25 = vadd.f32 %v1285_v12, %v3443_v29  ;;  %v1288_v2 = vpop.f32.mrb[46].mxu1 }
 0x453   : > { %v1302_v26 = vadd.f32 %v1301_v9, %v3638_v16  ;;  %v1323_v6 = vmul.f32 %v3638_v16, %v3638_v16  ;;  %v1289_v4 = vadd.f32 %v1288_v2, %v1202_v19  ;;  %v1290_v35 = vpop.f32.mrb[47].mxu1 }
 0x454   : > { %v1311_v3 = vadd.f32 %v1310_v22, %v3641_v25  ;;  %v1324_v13 = vmul.f32 %v3641_v25, %v3641_v25  ;;  %v1291_v42 = vadd.f32 %v1290_v35, %v1202_v19 }
 0x455   : > { %v1328_v30 = vadd.f32 %v1327_v14, %v1323_v6  ;;  %v3651_v29 = vadd.f32 %v1289_v4, %v3449_v36 }
 0x456   : > { %v1337_v45 = vadd.f32 %v1336_v17, %v1324_v13  ;;  %v3654_v47 = vadd.f32 %v1291_v42, %v3441_v28  ;;  %v1399_v17 = vpop.permute.xlu1 %1398 }
 0x457   : > { %v1303_v48 = vadd.f32 %v1302_v26, %v3651_v29  ;;  %v1325_v15 = vmul.f32 %v3651_v29, %v3651_v29 }
 0x458   : > { %v1312_v5 = vadd.f32 %v1311_v3, %v3654_v47  ;;  %v1326_v49 = vmul.f32 %v3654_v47, %v3654_v47 }
 0x459   : > { %v1304_v24 = vrot.slane %v1303_v48, 4  ;;  %v1329_v39 = vadd.f32 %v1328_v30, %v1325_v15  ;;  %v1379_v15 = vpop.permute.xlu0 %1378 }
 0x45a   : > { %v1313_v36 = vrot.slane %v1312_v5, 4  ;;  %v1338_v50 = vadd.f32 %v1337_v45, %v1326_v49 }
 0x45b   : > { %v1305_v18 = vadd.f32 %v1304_v24, %v1303_v48  ;;  %v1330_v53 = vrot.slane %v1329_v39, 4 }
 0x45c   : > { %v1314_v28 = vadd.f32 %v1313_v36, %v1312_v5  ;;  %v1339_v57 = vrot.slane %v1338_v50, 4 }
 0x45d   : > { %v1306_v62 = vrot.slane %v1305_v18, 2  ;;  %v1331_v31 = vadd.f32 %v1330_v53, %v1329_v39 }
 0x45e   : > { %v1315_v40 = vrot.slane %v1314_v28, 2  ;;  %v1340_v51 = vadd.f32 %v1339_v57, %v1338_v50 }
 0x45f   : > { %v1307_v8 = vadd.f32 %v1306_v62, %v1305_v18  ;;  %v1332_v46 = vrot.slane %v1331_v31, 2 }
 0x460   : > { %v1316_v21 = vadd.f32 %v1315_v40, %v1314_v28  ;;  %v1341_v63 = vrot.slane %v1340_v51, 2 }
 0x461   : > { %v1308_v33 = vrot.slane %v1307_v8, 1  ;;  %v1333_v34 = vadd.f32 %v1332_v46, %v1331_v31 }
 0x462   : > { %v1317_v38 = vrot.slane %v1316_v21, 1  ;;  %v1342_v37 = vadd.f32 %v1341_v63, %v1340_v51 }
 0x463   : > { %v1309_v43 = vadd.f32 %v1308_v33, %v1307_v8  ;;  %v1334_v20 = vrot.slane %v1333_v34, 1 }
 0x464   : > { %v1318_v9 = vadd.f32 %v1317_v38, %v1316_v21  ;;  %v1343_v23 = vrot.slane %v1342_v37, 1 }
 0x465   : > { %v1335_v0 = vadd.f32 %v1334_v20, %v1333_v34  ;;  %v1345_v11 = vmul.f32 0.03125, %v1309_v43 }
 0x466   : > { %v1344_v56 = vadd.f32 %v1343_v23, %v1342_v37  ;;  %v1346_v22 = vmul.f32 0.03125, %v1318_v9 }
 0x467   : > { %v1347_v27 = vmul.f32 0.03125, %v1335_v0  ;;  %v1349_v12 = vmul.f32 %v1345_v11, %v1345_v11  ;;  %v1353_v14 = vsub.f32 %v3612_v32, %v1345_v11  ;;  %v1355_v19 = vsub.f32 %v3619_v10, %v1345_v11  ;;  %v1403_v10 = vpop.permute.xlu1 %1402 }
 0x468   : > { %v1348_v2 = vmul.f32 0.03125, %v1344_v56  ;;  %v1350_v26 = vmul.f32 %v1346_v22, %v1346_v22  ;;  %v1354_v6 = vsub.f32 %v3615_v52, %v1346_v22  ;;  %v1356_v4 = vsub.f32 %v3622_v7, %v1346_v22  ;;  %v1383_v52 = vpop.permute.xlu0 %1382  ;;  %v2572_v56 = vld [vmem:[%s4020_s2 + $0xa8] sm:$0xff] }
 0x469   : > { %v1351_v35 = vsub.f32 %v1347_v27, %v1349_v12  ;;  %v1359_v3 = vsub.f32 %v3651_v29, %v1345_v11  ;;  %v1360_v13 = vsub.f32 %v3654_v47, %v1346_v22  ;;  %v1357_v42 = vsub.f32 %v3638_v16, %v1345_v11  ;;  %v2574_v27 = vld [vmem:[%s4020_s2 + $0xb8] sm:$0xff] }
 0x46a   : > { %v1352_v30 = vsub.f32 %v1348_v2, %v1350_v26  ;;  %v1358_v45 = vsub.f32 %v3641_v25, %v1346_v22  ;;  %v2573_v22 = vld [vmem:[%s4020_s2 + $0xb0] sm:$0xff] }
 0x46b   : > { %v1361_v32 = vadd.f32 1e-05, %v1351_v35  ;;  %v1387_v5 = vpop.permute.xlu1 %1386 }
 0x46c   : > { %v1362_v48 = vadd.f32 1e-05, %v1352_v30  ;;  %v1407_v25 = vpop.permute.xlu0 %1406 }
 0x46d   : > { %2924 = vrsqrt.f32 %v1361_v32 }
 0x46e   : > { %2926 = vrsqrt.f32 %v1362_v48 }
 0x46f   : > { %v1411_v53 = vpop.permute.xlu1 %1410 }
 0x473   : > { %v1428_v12 = vpop.permute.xlu1 %1427 }
 0x477   : > { %v2925_v49 = vpop.eup %2924 }
 0x478   : > { %v2927_v7 = vpop.eup %2926  ;;  %v1365_v24 = vmul.f32 %v2925_v49, %v1353_v14  ;;  %v1367_v39 = vmul.f32 %v2925_v49, %v1355_v19  ;;  %v1371_v29 = vmul.f32 %v2925_v49, %v1359_v3  ;;  %v1369_v36 = vmul.f32 %v2925_v49, %v1357_v42  ;;  %v1432_v19 = vpop.permute.xlu0 %1431 }
 0x479   : > { %v1366_v47 = vmul.f32 %v2927_v7, %v1354_v6  ;;  %v1368_v50 = vmul.f32 %v2927_v7, %v1356_v4  ;;  %v1372_v16 = vmul.f32 %v2927_v7, %v1360_v13  ;;  %v1370_v18 = vmul.f32 %v2927_v7, %v1358_v45  ;;  %v1436_v3 = vpop.permute.xlu1 %1435 }
 0x47a   : > { %v1389_v28 = vmul.f32 %v1375_v61, %v1365_v24  ;;  %v1391_v57 = vmul.f32 %v1379_v15, %v1367_v39  ;;  %v1395_v62 = vmul.f32 %v1387_v5, %v1371_v29  ;;  %v1393_v31 = vmul.f32 %v1383_v52, %v1369_v36 }
 0x47b   : > { %v1390_v40 = vmul.f32 %v1375_v61, %v1366_v47  ;;  %v1392_v51 = vmul.f32 %v1379_v15, %v1368_v50  ;;  %v1396_v8 = vmul.f32 %v1387_v5, %v1372_v16  ;;  %v1394_v46 = vmul.f32 %v1383_v52, %v1370_v18  ;;  %v2571_v61 = vld [vmem:[%s4020_s2 + $0xa0] sm:$0xff] }
 0x47c   : > { %v1413_v21 = vadd.f32 %v1399_v17, %v1389_v28  ;;  %v1415_v63 = vadd.f32 %v1403_v10, %v1391_v57  ;;  %v1419_v33 = vadd.f32 %v1411_v53, %v1395_v62  ;;  %v1417_v34 = vadd.f32 %v1407_v25, %v1393_v31 }
 0x47d   : > { %v1414_v38 = vadd.f32 %v1399_v17, %v1390_v40  ;;  %v1416_v37 = vadd.f32 %v1403_v10, %v1392_v51  ;;  %v1420_v43 = vadd.f32 %v1411_v53, %v1396_v8  ;;  %v1418_v20 = vadd.f32 %v1407_v25, %v1394_v46  ;;  %v1440_v36 = vpop.permute.xlu1 %1439 }
 0x47e   : > { %v2768_v9 = vpack.c.bf16 %v1415_v63, %v1413_v21  ;;  %v2772_v23 = vpack.c.bf16 %v1419_v33, %v1417_v34 }
 0x47f   : > { %v2770_v0 = vpack.c.bf16 %v1420_v43, %v1418_v20  ;;  %v2766_v11 = vpack.c.bf16 %v1416_v37, %v1414_v38 }
 0x481   : > { %2767 = vmatprep.subr.bf16.mxu0 %v2766_v11 }
 0x482   : > { %2769 = vmatpush1.bf16.msra.mxu0 %v2768_v9 }
 0x483   : > { %2771 = vmatprep.subr.bf16.mxu0 %v2770_v0 }
 0x486   : > { %2773 = vmatpush1.bf16.msra.mxu0 %v2772_v23 }
 0x489   : > { %2575 = vmatmul.mubr.msk.f32.vlgmr.msra.gmra.mrb[8].mxu0 %vm609_vm2, %v2571_v61 }
 0x48a   : > { %1524 = vmatprep.mubr.f32.mxu0 %v3013_v58 }
 0x48d   : > { %2576 = vmatmul.mubr.msk.f32.gmra.mrb[10].mxu0 %vm609_vm2, %v2572_v56 }
 0x48e   : > { %1530 = vmatprep.mubr.f32.mxu0 %v3013_v58 }
 0x491   : > { %2577 = vmatmul.mubr.msk.f32.gmra.mrb[12].mxu0 %vm609_vm2, %v2573_v22 }
 0x492   : > { %1536 = vmatprep.mubr.f32.mxu0 %v3013_v58 }
 0x495   : > { %2578 = vmatmul.mubr.msk.f32.gmra.mrb[14].mxu0 %vm609_vm2, %v2574_v27 }
 0x496   : > { %1855 = vmatprep.mubr.f32.mxu0 %v3013_v58 }
 0x55c   : > { %v1520_v14 = vpop.f32.mrb[8].mxu0 }
 0x55d   : > { %v1522_v17 = vpop.f32.mrb[9].mxu0  ;;  %v3691_v2 = vadd.f32 %v1520_v14, %v1428_v12 }
 0x55e   : > { %v3693_v26 = vadd.f32 %v1522_v17, %v1428_v12  ;;  %v1621_v17 = vpop.permute.xlu1 %1620 }
 0x55f   : > { %v1561_v42 = vmul.f32 %v3691_v2, %v3691_v2 }
 0x560   : > { %v1526_v6 = vpop.f32.mrb[10].mxu0  ;;  %v1562_v32 = vmul.f32 %v3693_v26, %v3693_v26 }
 0x561   : > { %v3695_v4 = vadd.f32 %v1526_v6, %v1432_v19  ;;  %v1528_v35 = vpop.f32.mrb[11].mxu0 }
 0x562   : > { %v3697_v13 = vadd.f32 %v1528_v35, %v1432_v19 }
 0x563   : > { %v1543_v30 = vadd.f32 %v3695_v4, %v3691_v2  ;;  %v1563_v45 = vmul.f32 %v3695_v4, %v3695_v4 }
 0x564   : > { %v1552_v48 = vadd.f32 %v3697_v13, %v3693_v26  ;;  %v1564_v10 = vmul.f32 %v3697_v13, %v3697_v13  ;;  %v1532_v15 = vpop.f32.mrb[12].mxu0 }
 0x565   : > { %v1569_v5 = vadd.f32 %v1563_v45, %v1561_v42  ;;  %v3711_v52 = vadd.f32 %v1532_v15, %v1436_v3  ;;  %v1534_v49 = vpop.f32.mrb[13].mxu0 }
 0x566   : > { %v1578_v7 = vadd.f32 %v1564_v10, %v1562_v32  ;;  %v3713_v24 = vadd.f32 %v1534_v49, %v1436_v3 }
 0x567   : > { %v1544_v39 = vadd.f32 %v1543_v30, %v3711_v52  ;;  %v1565_v29 = vmul.f32 %v3711_v52, %v3711_v52 }
 0x568   : > { %v1553_v47 = vadd.f32 %v1552_v48, %v3713_v24  ;;  %v1566_v50 = vmul.f32 %v3713_v24, %v3713_v24  ;;  %v1538_v16 = vpop.f32.mrb[14].mxu0 }
 0x569   : > { %v1570_v18 = vadd.f32 %v1569_v5, %v1565_v29  ;;  %v3721_v53 = vadd.f32 %v1538_v16, %v1440_v36  ;;  %v1540_v25 = vpop.f32.mrb[15].mxu0 }
 0x56a   : > { %v1579_v28 = vadd.f32 %v1578_v7, %v1566_v50  ;;  %v3723_v57 = vadd.f32 %v1540_v25, %v1440_v36  ;;  %v1641_v36 = vpop.permute.xlu1 %1640 }
 0x56b   : > { %v1545_v62 = vadd.f32 %v1544_v39, %v3721_v53  ;;  %v1567_v31 = vmul.f32 %v3721_v53, %v3721_v53 }
 0x56c   : > { %v1554_v40 = vadd.f32 %v1553_v47, %v3723_v57  ;;  %v1568_v51 = vmul.f32 %v3723_v57, %v3723_v57 }
 0x56d   : > { %v1546_v8 = vrot.slane %v1545_v62, 4  ;;  %v1571_v46 = vadd.f32 %v1570_v18, %v1567_v31  ;;  %v1617_v31 = vpop.permute.xlu0 %1616 }
 0x56e   : > { %v1555_v21 = vrot.slane %v1554_v40, 4  ;;  %v1580_v63 = vadd.f32 %v1579_v28, %v1568_v51 }
 0x56f   : > { %v1547_v33 = vadd.f32 %v1546_v8, %v1545_v62  ;;  %v1572_v34 = vrot.slane %v1571_v46, 4 }
 0x570   : > { %v1556_v38 = vadd.f32 %v1555_v21, %v1554_v40  ;;  %v1581_v37 = vrot.slane %v1580_v63, 4 }
 0x571   : > { %v1548_v43 = vrot.slane %v1547_v33, 2  ;;  %v1573_v20 = vadd.f32 %v1572_v34, %v1571_v46  ;;  %v1645_v40 = vpop.permute.xlu0 %1644 }
 0x572   : > { %v1557_v9 = vrot.slane %v1556_v38, 2  ;;  %v1582_v23 = vadd.f32 %v1581_v37, %v1580_v63 }
 0x573   : > { %v1549_v0 = vadd.f32 %v1548_v43, %v1547_v33  ;;  %v1574_v11 = vrot.slane %v1573_v20, 2 }
 0x574   : > { %v1558_v61 = vadd.f32 %v1557_v9, %v1556_v38  ;;  %v1583_v56 = vrot.slane %v1582_v23, 2 }
 0x575   : > { %v1550_v22 = vrot.slane %v1549_v0, 1  ;;  %v1575_v27 = vadd.f32 %v1574_v11, %v1573_v20  ;;  %v1649_v37 = vpop.permute.xlu0 %1648 }
 0x576   : > { %v1559_v12 = vrot.slane %v1558_v61, 1  ;;  %v1584_v14 = vadd.f32 %v1583_v56, %v1582_v23 }
 0x577   : > { %v1551_v19 = vadd.f32 %v1550_v22, %v1549_v0  ;;  %v1576_v6 = vrot.slane %v1575_v27, 1 }
 0x578   : > { %v1560_v35 = vadd.f32 %v1559_v12, %v1558_v61  ;;  %v1585_v3 = vrot.slane %v1584_v14, 1 }
 0x579   : > { %v1577_v42 = vadd.f32 %v1576_v6, %v1575_v27  ;;  %v1587_v30 = vmul.f32 0.03125, %v1551_v19 }
 0x57a   : > { %v1586_v45 = vadd.f32 %v1585_v3, %v1584_v14  ;;  %v1588_v32 = vmul.f32 0.03125, %v1560_v35 }
 0x57b   : > { %v1589_v48 = vmul.f32 0.03125, %v1577_v42  ;;  %v1591_v10 = vmul.f32 %v1587_v30, %v1587_v30  ;;  %v1601_v15 = vsub.f32 %v3721_v53, %v1587_v30  ;;  %v1597_v5 = vsub.f32 %v3695_v4, %v1587_v30  ;;  %v1625_v4 = vpop.permute.xlu1 %1624 }
 0x57c   : > { %v1590_v49 = vmul.f32 0.03125, %v1586_v45  ;;  %v1592_v7 = vmul.f32 %v1588_v32, %v1588_v32  ;;  %v1602_v39 = vsub.f32 %v3723_v57, %v1588_v32  ;;  %v1598_v29 = vsub.f32 %v3697_v13, %v1588_v32  ;;  %v2580_v45 = vld [vmem:[%s4020_s2 + $0xc8] sm:$0xff] }
 0x57d   : > { %v1593_v47 = vsub.f32 %v1589_v48, %v1591_v10  ;;  %v1599_v50 = vsub.f32 %v3711_v52, %v1587_v30  ;;  %v1600_v16 = vsub.f32 %v3713_v24, %v1588_v32  ;;  %v1595_v18 = vsub.f32 %v3691_v2, %v1587_v30  ;;  %v2579_v30 = vld [vmem:[%s4020_s2 + $0xc0] sm:$0xff]  ;;  %v2582_v48 = vld [vmem:[%s4020_s2 + $0xd8] sm:$0xff] }
 0x57e   : > { %v1594_v25 = vsub.f32 %v1590_v49, %v1592_v7  ;;  %v1596_v28 = vsub.f32 %v3693_v26, %v1588_v32  ;;  %v2581_v32 = vld [vmem:[%s4020_s2 + $0xd0] sm:$0xff]  ;;  %v2583_v10 = vld [vmem:[%s4020_s2 + $0xe0] sm:$0xff]  ;;  %v2586_v49 = vld [vmem:[%s4020_s2 + $0xf8] sm:$0xff] }
 0x57f   : > { %v1603_v53 = vadd.f32 1e-05, %v1593_v47  ;;  %v1629_v57 = vpop.permute.xlu1 %1628  ;;  %v2587_v7 = vld [vmem:[%s4020_s2 + $0x100] sm:$0xff] }
 0x580   : > { %v1604_v62 = vadd.f32 1e-05, %v1594_v25  ;;  %v2591_v47 = vld [vmem:[%s4020_s2 + $0x120] sm:$0xff]  ;;  %v3023_v25 = vmov 10  }
 0x581   : > { %2928 = vrsqrt.f32 %v1603_v53  ;;  %2906 = vset.pattern.permute.xlu1 %v3023_v25  ;;  %2907 = vset.pattern.permute.xlu0 %v3023_v25  ;;  %v3025_v53 = vmov 12  }
 0x582   : > { %2930 = vrsqrt.f32 %v1604_v62  ;;  %1990 = vperm.xlu1 %2906, %v3568_v41   ;;  %1994 = vperm.xlu0 %2907, %v3574_v54   ;;  %v1681_v62 = vpop.permute.xlu0 %1680 }
 0x583   : > { %v1653_v38 = vpop.permute.xlu1 %1652 }
 0x586   : > { %1998 = vperm.xlu1 %2906, %v3580_v55  }
 0x58a   : > { %2002 = vperm.xlu1 %2906, %v3587_v44  }
 0x58b   : > { %v2929_v13 = vpop.eup %2928 }
 0x58c   : > { %v2931_v51 = vpop.eup %2930  ;;  %v1609_v8 = vmul.f32 %v2929_v13, %v1597_v5  ;;  %v1611_v46 = vmul.f32 %v2929_v13, %v1599_v50  ;;  %v1607_v52 = vmul.f32 %v2929_v13, %v1595_v18  ;;  %v1613_v21 = vmul.f32 %v2929_v13, %v1601_v15  ;;  %v2584_v15 = vld [vmem:[%s4020_s2 + $0xe8] sm:$0xff]  ;;  %v2585_v5 = vld [vmem:[%s4020_s2 + $0xf0] sm:$0xff]  ;;  %v2594_v18 = vld [vmem:[%s4020_s2 + $0x138] sm:$0xff] }
 0x58d   : > { %v1610_v24 = vmul.f32 %v2931_v51, %v1598_v29  ;;  %v1612_v63 = vmul.f32 %v2931_v51, %v1600_v16  ;;  %v1608_v2 = vmul.f32 %v2931_v51, %v1596_v28  ;;  %v1614_v33 = vmul.f32 %v2931_v51, %v1602_v39  ;;  %v2588_v39 = vld [vmem:[%s4020_s2 + $0x108] sm:$0xff]  ;;  %v2589_v29 = vld [vmem:[%s4020_s2 + $0x110] sm:$0xff] }
 0x58e   : > { %v1633_v34 = vmul.f32 %v1621_v17, %v1609_v8  ;;  %v1631_v26 = vmul.f32 %v1617_v31, %v1607_v52  ;;  %v1635_v0 = vmul.f32 %v1625_v4, %v1611_v46  ;;  %v1637_v61 = vmul.f32 %v1629_v57, %v1613_v21  ;;  %v2592_v50 = vld [vmem:[%s4020_s2 + $0x128] sm:$0xff]  ;;  %v2593_v16 = vld [vmem:[%s4020_s2 + $0x130] sm:$0xff] }
 0x58f   : > { %v1634_v43 = vmul.f32 %v1621_v17, %v1610_v24  ;;  %v1636_v20 = vmul.f32 %v1625_v4, %v1612_v63  ;;  %v1632_v9 = vmul.f32 %v1617_v31, %v1608_v2  ;;  %v1638_v23 = vmul.f32 %v1629_v57, %v1614_v33  ;;  %v1685_v31 = vpop.permute.xlu1 %1684 }
 0x590   : > { %v3739_v11 = vadd.f32 %v1641_v36, %v1631_v26  ;;  %v3741_v56 = vadd.f32 %v1645_v40, %v1633_v34  ;;  %v3755_v6 = vadd.f32 %v1653_v38, %v1637_v61  ;;  %v3757_v35 = vadd.f32 %v1649_v37, %v1635_v0  ;;  %v1693_v34 = vpop.permute.xlu0 %1692 }
 0x591   : > { %v3743_v22 = vadd.f32 %v1641_v36, %v1632_v9  ;;  %v3745_v27 = vadd.f32 %v1645_v40, %v1634_v43  ;;  %v3747_v12 = vadd.f32 %v1653_v38, %v1638_v23  ;;  %v3749_v14 = vadd.f32 %v1649_v37, %v1636_v20  ;;  %v2590_v36 = vld [vmem:[%s4020_s2 + $0x118] sm:$0xff] }
 0x592   : > { %v2776_v19 = vpack.c.bf16 %v3741_v56, %v3739_v11  ;;  %v2780_v42 = vpack.c.bf16 %v3755_v6, %v3757_v35  ;;  %v3024_v28 = vmov 11  }
 0x593   : > { %v2774_v17 = vpack.c.bf16 %v3745_v27, %v3743_v22  ;;  %v2778_v3 = vpack.c.bf16 %v3747_v12, %v3749_v14  ;;  %2908 = vset.pattern.permute.xlu0 %v3024_v28  ;;  %2909 = vset.pattern.permute.xlu1 %v3024_v28  ;;  %v1689_v24 = vpop.permute.xlu1 %1688 }
 0x594   : > { %2175 = vperm.xlu0 %2908, %v3568_v41   ;;  %2179 = vperm.xlu1 %2909, %v3574_v54  }
 0x595   : > { %2775 = vmatprep.subr.bf16.mxu0 %v2774_v17 }
 0x596   : > { %2777 = vmatpush1.bf16.msra.mxu0 %v2776_v19 }
 0x597   : > { %2779 = vmatprep.subr.bf16.mxu0 %v2778_v3 }
 0x598   : > { %2911 = vset.pattern.permute.xlu0 %v3025_v53  ;;  %2910 = vset.pattern.permute.xlu1 %v3025_v53 }
 0x599   : > { %2203 = vperm.xlu0 %2911, %v3574_v54   ;;  %2199 = vperm.xlu1 %2910, %v3568_v41  }
 0x59a   : > { %2781 = vmatpush1.bf16.msra.mxu0 %v2780_v42  ;;  %v1697_v42 = vpop.permute.xlu1 %1696 }
 0x59d   : > { %2595 = vmatmul.mubr.msk.f32.vlgmr.msra.gmra.mrb[16].mxu0 %vm609_vm2, %v2579_v30  ;;  %2207 = vperm.xlu0 %2911, %v3580_v55  }
 0x59e   : > { %1861 = vmatprep.mubr.f32.mxu0 %v3013_v58  ;;  %2912 = vset.pattern.permute.xlu1 %v3024_v28 }
 0x59f   : > { %2183 = vperm.xlu1 %2912, %v3580_v55  }
 0x5a1   : > { %2596 = vmatmul.mubr.msk.f32.gmra.mrb[18].mxu0 %vm609_vm2, %v2580_v45  ;;  %2914 = vset.pattern.permute.xlu0 %v3012_v1 }
 0x5a2   : > { %1867 = vmatprep.mubr.f32.mxu0 %v3013_v58 }
 0x5a3   : > { %2187 = vperm.xlu1 %2912, %v3587_v44  }
 0x5a5   : > { %2597 = vmatmul.mubr.msk.f32.gmra.mrb[20].mxu0 %vm609_vm2, %v2581_v32  ;;  %v1701_v32 = vpop.permute.xlu0 %1700 }
 0x5a6   : > { %1873 = vmatprep.mubr.f32.mxu0 %v3013_v58 }
 0x5a7   : > { %2913 = vset.pattern.permute.xlu1 %v3025_v53 }
 0x5a8   : > { %2211 = vperm.xlu1 %2913, %v3587_v44  }
 0x5a9   : > { %2598 = vmatmul.mubr.msk.f32.gmra.mrb[22].mxu0 %vm609_vm2, %v2582_v48  ;;  %v1709_v53 = vpop.permute.xlu0 %1708 }
 0x5aa   : > { %1879 = vmatprep.mubr.f32.mxu0 %v3013_v58 }
 0x5ac   : > { %2915 = vset.pattern.permute.xlu1 %v3012_v1 }
 0x5ad   : > { %2599 = vmatmul.mubr.msk.f32.gmra.mrb[24].mxu0 %vm609_vm2, %v2583_v10 }
 0x5ae   : > { %1885 = vmatprep.mubr.f32.mxu0 %v3013_v58 }
 0x5b1   : > { %2600 = vmatmul.mubr.msk.f32.gmra.mrb[26].mxu0 %vm609_vm2, %v2584_v15 }
 0x5b2   : > { %1891 = vmatprep.mubr.f32.mxu0 %v3013_v58 }
 0x5b5   : > { %2601 = vmatmul.mubr.msk.f32.gmra.mrb[28].mxu0 %vm609_vm2, %v2585_v5 }
 0x5b6   : > { %1897 = vmatprep.mubr.f32.mxu0 %v3013_v58 }
 0x5b9   : > { %2602 = vmatmul.mubr.msk.f32.gmra.mrb[30].mxu0 %vm609_vm2, %v2586_v49 }
 0x5ba   : > { %1903 = vmatprep.mubr.f32.mxu0 %v3013_v58 }
 0x5bd   : > { %2603 = vmatmul.mubr.msk.f32.gmra.mrb[32].mxu0 %vm609_vm2, %v2587_v7 }
 0x5be   : > { %1909 = vmatprep.mubr.f32.mxu0 %v3013_v58 }
 0x5c1   : > { %2604 = vmatmul.mubr.msk.f32.gmra.mrb[34].mxu0 %vm609_vm2, %v2588_v39 }
 0x5c2   : > { %1915 = vmatprep.mubr.f32.mxu0 %v3013_v58 }
 0x5c5   : > { %2605 = vmatmul.mubr.msk.f32.gmra.mrb[36].mxu0 %vm609_vm2, %v2589_v29 }
 0x5c6   : > { %1921 = vmatprep.mubr.f32.mxu0 %v3013_v58 }
 0x5c9   : > { %2606 = vmatmul.mubr.msk.f32.gmra.mrb[38].mxu0 %vm609_vm2, %v2590_v36 }
 0x5ca   : > { %1927 = vmatprep.mubr.f32.mxu0 %v3013_v58 }
 0x5cd   : > { %2607 = vmatmul.mubr.msk.f32.gmra.mrb[40].mxu0 %vm609_vm2, %v2591_v47 }
 0x5ce   : > { %1933 = vmatprep.mubr.f32.mxu0 %v3013_v58 }
 0x5d1   : > { %2608 = vmatmul.mubr.msk.f32.gmra.mrb[42].mxu0 %vm609_vm2, %v2592_v50 }
 0x5d2   : > { %1939 = vmatprep.mubr.f32.mxu0 %v3013_v58 }
 0x5d5   : > { %2609 = vmatmul.mubr.msk.f32.gmra.mrb[44].mxu0 %vm609_vm2, %v2593_v16 }
 0x5d6   : > { %1945 = vmatprep.mubr.f32.mxu0 %v3013_v58 }
 0x5d9   : > { %2610 = vmatmul.mubr.msk.f32.gmra.mrb[46].mxu0 %vm609_vm2, %v2594_v18  ;;  %v1705_v18 = vpop.permute.xlu1 %1704 }
 0x670   : > { %v1857_v4 = vpop.f32.mrb[16].mxu0 }
 0x671   : > { %v1859_v54 = vpop.f32.mrb[17].mxu0  ;;  %v1858_v57 = vadd.f32 %v1857_v4, %v1681_v62 }
 0x672   : > { %v1860_v40 = vadd.f32 %v1859_v54, %v1681_v62 }
 0x673   : > { %v1952_v46 = vmax.f32 %v1858_v57, 0.0 }
 0x674   : > { %v1863_v13 = vpop.f32.mrb[18].mxu0  ;;  %v1953_v55 = vmax.f32 %v1860_v40, 0.0 }
 0x675   : > { %v1864_v41 = vadd.f32 %v1863_v13, %v1685_v31  ;;  %v1865_v51 = vpop.f32.mrb[19].mxu0 }
 0x676   : > { %v1866_v8 = vadd.f32 %v1865_v51, %v1685_v31 }
 0x677   : > { %v1954_v52 = vmax.f32 %v1864_v41, 0.0 }
 0x678   : > { %v1955_v21 = vmax.f32 %v1866_v8, 0.0  ;;  %v1869_v63 = vpop.f32.mrb[20].mxu0 }
 0x679   : > { %v2784_v2 = vpack.c.bf16 %v1954_v52, %v1952_v46  ;;  %v1871_v44 = vpop.f32.mrb[21].mxu0  ;;  %v1870_v1 = vadd.f32 %v1869_v63, %v1689_v24  ;;  %v1717_v63 = vpop.permute.xlu0 %1716 }
 0x67a   : > { %v2782_v33 = vpack.c.bf16 %v1955_v21, %v1953_v55  ;;  %v1872_v26 = vadd.f32 %v1871_v44, %v1689_v24  ;;  %v1713_v55 = vpop.permute.xlu1 %1712 }
 0x67b   : > { %v1956_v9 = vmax.f32 %v1870_v1, 0.0 }
 0x67c   : > { %v1875_v38 = vpop.f32.mrb[22].mxu0  ;;  %2783 = vmatprep.subr.bf16.mxu1 %v2782_v33  ;;  %v1957_v0 = vmax.f32 %v1872_v26, 0.0 }
 0x67d   : > { %v1876_v37 = vadd.f32 %v1875_v38, %v1693_v34  ;;  %v1877_v43 = vpop.f32.mrb[23].mxu0  ;;  %2785 = vmatpush1.bf16.msra.mxu1 %v2784_v2 }
 0x67e   : > { %v1878_v20 = vadd.f32 %v1877_v43, %v1693_v34 }
 0x67f   : > { %v1958_v23 = vmax.f32 %v1876_v37, 0.0 }
 0x680   : > { %v1959_v61 = vmax.f32 %v1878_v20, 0.0  ;;  %v1881_v17 = vpop.f32.mrb[24].mxu0 }
 0x681   : > { %v2788_v19 = vpack.c.bf16 %v1958_v23, %v1956_v9  ;;  %v1883_v3 = vpop.f32.mrb[25].mxu0  ;;  %v1882_v45 = vadd.f32 %v1881_v17, %v1697_v42 }
 0x682   : > { %v2786_v30 = vpack.c.bf16 %v1959_v61, %v1957_v0  ;;  %v1884_v48 = vadd.f32 %v1883_v3, %v1697_v42  ;;  %v1721_v0 = vpop.permute.xlu1 %1720 }
 0x683   : > { %v1960_v7 = vmax.f32 %v1882_v45, 0.0 }
 0x684   : > { %v1887_v10 = vpop.f32.mrb[26].mxu0  ;;  %2787 = vmatprep.subr.bf16.mxu1 %v2786_v30  ;;  %v1961_v29 = vmax.f32 %v1884_v48, 0.0 }
 0x685   : > { %v1888_v15 = vadd.f32 %v1887_v10, %v1701_v32  ;;  %v1889_v5 = vpop.f32.mrb[27].mxu0  ;;  %2789 = vmatpush1.bf16.msra.mxu1 %v2788_v19  ;;  %v1725_v19 = vpop.permute.xlu0 %1724 }
 0x686   : > { %v1890_v49 = vadd.f32 %v1889_v5, %v1701_v32 }
 0x687   : > { %v1962_v39 = vmax.f32 %v1888_v15, 0.0 }
 0x688   : > { %v1963_v36 = vmax.f32 %v1890_v49, 0.0  ;;  %v1893_v47 = vpop.f32.mrb[28].mxu0 }
 0x689   : > { %v2792_v50 = vpack.c.bf16 %v1962_v39, %v1960_v7  ;;  %v1895_v16 = vpop.f32.mrb[29].mxu0  ;;  %v1894_v28 = vadd.f32 %v1893_v47, %v1705_v18 }
 0x68a   : > { %v2790_v25 = vpack.c.bf16 %v1963_v36, %v1961_v29  ;;  %v1896_v62 = vadd.f32 %v1895_v16, %v1705_v18  ;;  %v1729_v29 = vpop.permute.xlu1 %1728 }
 0x68b   : > { %v1964_v40 = vmax.f32 %v1894_v28, 0.0 }
 0x68c   : > { %v1899_v4 = vpop.f32.mrb[30].mxu0  ;;  %2791 = vmatprep.subr.bf16.mxu1 %v2790_v25  ;;  %v1965_v41 = vmax.f32 %v1896_v62, 0.0 }
 0x68d   : > { %v1900_v54 = vadd.f32 %v1899_v4, %v1709_v53  ;;  %v1901_v31 = vpop.f32.mrb[31].mxu0  ;;  %2793 = vmatpush1.bf16.msra.mxu1 %v2792_v50  ;;  %v1733_v50 = vpop.permute.xlu0 %1732 }
 0x68e   : > { %v1902_v57 = vadd.f32 %v1901_v31, %v1709_v53 }
 0x68f   : > { %v1966_v13 = vmax.f32 %v1900_v54, 0.0 }
 0x690   : > { %v1967_v51 = vmax.f32 %v1902_v57, 0.0  ;;  %v1905_v8 = vpop.f32.mrb[32].mxu0 }
 0x691   : > { %v2796_v46 = vpack.c.bf16 %v1966_v13, %v1964_v40  ;;  %v1907_v52 = vpop.f32.mrb[33].mxu0  ;;  %v1906_v24 = vadd.f32 %v1905_v8, %v1713_v55 }
 0x692   : > { %v2794_v21 = vpack.c.bf16 %v1967_v51, %v1965_v41  ;;  %v1908_v2 = vadd.f32 %v1907_v52, %v1713_v55  ;;  %v1737_v41 = vpop.permute.xlu1 %1736 }
 0x693   : > { %v1968_v26 = vmax.f32 %v1906_v24, 0.0 }
 0x694   : > { %v1911_v44 = vpop.f32.mrb[34].mxu0  ;;  %2795 = vmatprep.subr.bf16.mxu1 %v2794_v21  ;;  %v1969_v37 = vmax.f32 %v1908_v2, 0.0 }
 0x695   : > { %v1912_v33 = vadd.f32 %v1911_v44, %v1717_v63  ;;  %v1913_v1 = vpop.f32.mrb[35].mxu0  ;;  %2797 = vmatpush1.bf16.msra.mxu1 %v2796_v46  ;;  %v1741_v46 = vpop.permute.xlu0 %1740 }
 0x696   : > { %v1914_v34 = vadd.f32 %v1913_v1, %v1717_v63 }
 0x697   : > { %v1970_v38 = vmax.f32 %v1912_v33, 0.0 }
 0x698   : > { %v1971_v43 = vmax.f32 %v1914_v34, 0.0  ;;  %v1917_v20 = vpop.f32.mrb[36].mxu0 }
 0x699   : > { %v2800_v9 = vpack.c.bf16 %v1970_v38, %v1968_v26  ;;  %v1919_v23 = vpop.f32.mrb[37].mxu0  ;;  %v1918_v17 = vadd.f32 %v1917_v20, %v1721_v0  ;;  %v2611_v38 = vld [vmem:[%s4021_s3 + $0x20] sm:$0xff]  ;;  %v2614_v20 = vld [vmem:[%s4021_s3 + $0x38] sm:$0xff] }
 0x69a   : > { %v2798_v61 = vpack.c.bf16 %v1971_v43, %v1969_v37  ;;  %v1920_v3 = vadd.f32 %v1919_v23, %v1721_v0  ;;  %v2612_v37 = vld [vmem:[%s4021_s3 + $0x28] sm:$0xff]  ;;  %v2613_v43 = vld [vmem:[%s4021_s3 + $0x30] sm:$0xff]  ;;  %v2222_v23 = vld [vmem:[%s4025_s7] sm:$0xff]  ;;  %v1991_v0 = vpop.permute.xlu1 %1990 }
 0x69b   : > { %v1972_v48 = vmax.f32 %v1918_v17, 0.0  ;;  %2228 = vperm.xlu0 %2914, %v2222_v23  }
 0x69c   : > { %v1923_v42 = vpop.f32.mrb[38].mxu0  ;;  %2799 = vmatprep.subr.bf16.mxu1 %v2798_v61  ;;  %v1973_v15 = vmax.f32 %v1920_v3, 0.0 }
 0x69d   : > { %v1924_v30 = vadd.f32 %v1923_v42, %v1725_v19  ;;  %v1925_v45 = vpop.f32.mrb[39].mxu0  ;;  %2801 = vmatpush1.bf16.msra.mxu1 %v2800_v9  ;;  %v2223_v9 = vld [vmem:[%s4025_s7 + $0x8] sm:$0xff]  ;;  %v1995_v42 = vpop.permute.xlu0 %1994 }
 0x69e   : > { %v1926_v32 = vadd.f32 %v1925_v45, %v1725_v19  ;;  %2233 = vperm.xlu1 %2915, %v2223_v9  }
 0x69f   : > { %v1974_v10 = vmax.f32 %v1924_v30, 0.0  ;;  %2917 = vset.pattern.permute.xlu0 %v3014_v59 }
 0x6a0   : > { %v1975_v5 = vmax.f32 %v1926_v32, 0.0  ;;  %v1929_v49 = vpop.f32.mrb[40].mxu0  ;;  %2376 = vperm.xlu0 %2917, %v2223_v9  }
 0x6a1   : > { %v2804_v7 = vpack.c.bf16 %v1974_v10, %v1972_v48  ;;  %v1931_v39 = vpop.f32.mrb[41].mxu0  ;;  %v1930_v47 = vadd.f32 %v1929_v49, %v1729_v29  ;;  %v1999_v48 = vpop.permute.xlu1 %1998 }
 0x6a2   : > { %v2802_v36 = vpack.c.bf16 %v1975_v5, %v1973_v15  ;;  %v1932_v16 = vadd.f32 %v1931_v39, %v1729_v29  ;;  %2916 = vset.pattern.permute.xlu1 %v3014_v59 }
 0x6a3   : > { %v1976_v62 = vmax.f32 %v1930_v47, 0.0  ;;  %2372 = vperm.xlu1 %2916, %v2222_v23  }
 0x6a4   : > { %v1935_v18 = vpop.f32.mrb[42].mxu0  ;;  %2803 = vmatprep.subr.bf16.mxu1 %v2802_v36  ;;  %v1977_v54 = vmax.f32 %v1932_v16, 0.0  ;;  %2919 = vset.pattern.permute.xlu0 %v3015_v60 }
 0x6a5   : > { %v1936_v25 = vadd.f32 %v1935_v18, %v1733_v50  ;;  %v1937_v28 = vpop.f32.mrb[43].mxu0  ;;  %2805 = vmatpush1.bf16.msra.mxu1 %v2804_v7  ;;  %v2003_v18 = vpop.permute.xlu1 %2002 }
 0x6a6   : > { %v1938_v53 = vadd.f32 %v1937_v28, %v1733_v50 }
 0x6a7   : > { %v1978_v4 = vmax.f32 %v1936_v25, 0.0  ;;  %2918 = vset.pattern.permute.xlu1 %v3015_v60 }
 0x6a8   : > { %v1979_v31 = vmax.f32 %v1938_v53, 0.0  ;;  %v1941_v57 = vpop.f32.mrb[44].mxu0  ;;  %2384 = vperm.xlu1 %2918, %v2222_v23  }
 0x6a9   : > { %v2808_v40 = vpack.c.bf16 %v1978_v4, %v1976_v62  ;;  %v1943_v13 = vpop.f32.mrb[45].mxu0  ;;  %v1942_v8 = vadd.f32 %v1941_v57, %v1737_v41 }
 0x6aa   : > { %v2806_v51 = vpack.c.bf16 %v1979_v31, %v1977_v54  ;;  %v1944_v52 = vadd.f32 %v1943_v13, %v1737_v41 }
 0x6ab   : > { %v1980_v2 = vmax.f32 %v1942_v8, 0.0 }
 0x6ac   : > { %v1947_v55 = vpop.f32.mrb[46].mxu0  ;;  %2807 = vmatprep.subr.bf16.mxu1 %v2806_v51  ;;  %v1981_v33 = vmax.f32 %v1944_v52, 0.0  ;;  %2388 = vperm.xlu1 %2918, %v2223_v9  }
 0x6ad   : > { %v1948_v21 = vadd.f32 %v1947_v55, %v1741_v46  ;;  %v1949_v24 = vpop.f32.mrb[47].mxu0  ;;  %2809 = vmatpush1.bf16.msra.mxu1 %v2808_v40 }
 0x6ae   : > { %v1950_v63 = vadd.f32 %v1949_v24, %v1741_v46 }
 0x6af   : > { %v1982_v44 = vmax.f32 %v1948_v21, 0.0 }
 0x6b0   : > { %v1983_v1 = vmax.f32 %v1950_v63, 0.0 }
 0x6b1   : > { %v2812_v34 = vpack.c.bf16 %v1982_v44, %v1980_v2 }
 0x6b2   : > { %v2810_v26 = vpack.c.bf16 %v1983_v1, %v1981_v33 }
 0x6b4   : > { %2811 = vmatprep.subr.bf16.mxu1 %v2810_v26 }
 0x6b5   : > { %2813 = vmatpush1.bf16.msra.mxu1 %v2812_v34 }
 0x6b8   : > { %2070 = vmatmul.mubr.f32.vlgmr.msra.gmra.mrb[48].mxu1 %v2611_v38 }
 0x6b9   : > { %2075 = vmatprep.mubr.f32.mxu1 %v3013_v58 }
 0x6bc   : > { %2076 = vmatmul.mubr.f32.gmra.mrb[50].mxu1 %v2612_v37 }
 0x6bd   : > { %2081 = vmatprep.mubr.f32.mxu1 %v3013_v58 }
 0x6c0   : > { %2082 = vmatmul.mubr.f32.gmra.mrb[52].mxu1 %v2613_v43 }
 0x6c1   : > { %2087 = vmatprep.mubr.f32.mxu1 %v3013_v58 }
 0x6c4   : > { %2088 = vmatmul.mubr.f32.gmra.mrb[54].mxu1 %v2614_v20 }
 0x6c5   : > { %2306 = vmatprep.mubr.f32.mxu1 %v3013_v58 }
 0x78b   : > { %v2071_v61 = vpop.f32.mrb[48].mxu1 }
 0x78c   : > { %v2072_v17 = vadd.f32 %v2071_v61, %v1991_v0  ;;  %v2073_v19 = vpop.f32.mrb[49].mxu1  ;;  %v2180_v61 = vpop.permute.xlu1 %2179 }
 0x78d   : > { %v2074_v3 = vadd.f32 %v2073_v19, %v1991_v0 }
 0x78e   : > { %v3883_v45 = vadd.f32 %v2072_v17, %v3739_v11 }
 0x78f   : > { %v2077_v30 = vpop.f32.mrb[50].mxu1  ;;  %v3886_v10 = vadd.f32 %v2074_v3, %v3743_v22 }
 0x790   : > { %v2078_v32 = vadd.f32 %v2077_v30, %v1995_v42  ;;  %v2079_v59 = vpop.f32.mrb[51].mxu1  ;;  %v2120_v7 = vmul.f32 %v3883_v45, %v3883_v45 }
 0x791   : > { %v2080_v15 = vadd.f32 %v2079_v59, %v1995_v42  ;;  %v2121_v36 = vmul.f32 %v3886_v10, %v3886_v10 }
 0x792   : > { %v3889_v60 = vadd.f32 %v2078_v32, %v3741_v56 }
 0x793   : > { %v3892_v5 = vadd.f32 %v2080_v15, %v3745_v27  ;;  %v2083_v49 = vpop.f32.mrb[52].mxu1 }
 0x794   : > { %v2102_v11 = vadd.f32 %v3889_v60, %v3883_v45  ;;  %v2122_v39 = vmul.f32 %v3889_v60, %v3889_v60  ;;  %v2084_v29 = vadd.f32 %v2083_v49, %v1999_v48  ;;  %v2085_v22 = vpop.f32.mrb[53].mxu1 }
 0x795   : > { %v2111_v56 = vadd.f32 %v3892_v5, %v3886_v10  ;;  %v2123_v27 = vmul.f32 %v3892_v5, %v3892_v5  ;;  %v2086_v47 = vadd.f32 %v2085_v22, %v1999_v48 }
 0x796   : > { %v2128_v50 = vadd.f32 %v2122_v39, %v2120_v7  ;;  %v3907_v16 = vadd.f32 %v2084_v29, %v3757_v35  ;;  %v2200_v29 = vpop.permute.xlu1 %2199 }
 0x797   : > { %v2137_v25 = vadd.f32 %v2123_v27, %v2121_v36  ;;  %v3910_v28 = vadd.f32 %v2086_v47, %v3749_v14  ;;  %v2089_v53 = vpop.f32.mrb[54].mxu1 }
 0x798   : > { %v2103_v62 = vadd.f32 %v2102_v11, %v3907_v16  ;;  %v2124_v4 = vmul.f32 %v3907_v16, %v3907_v16  ;;  %v2090_v54 = vadd.f32 %v2089_v53, %v2003_v18  ;;  %v2091_v31 = vpop.f32.mrb[55].mxu1 }
 0x799   : > { %v2112_v57 = vadd.f32 %v2111_v56, %v3910_v28  ;;  %v2125_v40 = vmul.f32 %v3910_v28, %v3910_v28  ;;  %v2092_v35 = vadd.f32 %v2091_v31, %v2003_v18  ;;  %v2176_v31 = vpop.permute.xlu0 %2175 }
 0x79a   : > { %v2129_v13 = vadd.f32 %v2128_v50, %v2124_v4  ;;  %v3919_v41 = vadd.f32 %v2090_v54, %v3755_v6 }
 0x79b   : > { %v2138_v14 = vadd.f32 %v2137_v25, %v2125_v40  ;;  %v3922_v51 = vadd.f32 %v2092_v35, %v3747_v12 }
 0x79c   : > { %v2104_v8 = vadd.f32 %v2103_v62, %v3919_v41  ;;  %v2126_v46 = vmul.f32 %v3919_v41, %v3919_v41 }
 0x79d   : > { %v2113_v52 = vadd.f32 %v2112_v57, %v3922_v51  ;;  %v2127_v55 = vmul.f32 %v3922_v51, %v3922_v51 }
 0x79e   : > { %v2105_v21 = vrot.slane %v2104_v8, 4  ;;  %v2130_v24 = vadd.f32 %v2129_v13, %v2126_v46 }
 0x79f   : > { %v2114_v63 = vrot.slane %v2113_v52, 4  ;;  %v2139_v2 = vadd.f32 %v2138_v14, %v2127_v55 }
 0x7a0   : > { %v2106_v6 = vadd.f32 %v2105_v21, %v2104_v8  ;;  %v2131_v44 = vrot.slane %v2130_v24, 4 }
 0x7a1   : > { %v2115_v33 = vadd.f32 %v2114_v63, %v2113_v52  ;;  %v2140_v1 = vrot.slane %v2139_v2, 4 }
 0x7a2   : > { %v2107_v12 = vrot.slane %v2106_v6, 2  ;;  %v2132_v34 = vadd.f32 %v2131_v44, %v2130_v24 }
 0x7a3   : > { %v2116_v26 = vrot.slane %v2115_v33, 2  ;;  %v2141_v38 = vadd.f32 %v2140_v1, %v2139_v2 }
 0x7a4   : > { %v2108_v37 = vadd.f32 %v2107_v12, %v2106_v6  ;;  %v2133_v43 = vrot.slane %v2132_v34, 2 }
 0x7a5   : > { %v2117_v20 = vadd.f32 %v2116_v26, %v2115_v33  ;;  %v2142_v9 = vrot.slane %v2141_v38, 2 }
 0x7a6   : > { %v2109_v23 = vrot.slane %v2108_v37, 1  ;;  %v2134_v0 = vadd.f32 %v2133_v43, %v2132_v34 }
 0x7a7   : > { %v2118_v17 = vrot.slane %v2117_v20, 1  ;;  %v2143_v19 = vadd.f32 %v2142_v9, %v2141_v38 }
 0x7a8   : > { %v2110_v3 = vadd.f32 %v2109_v23, %v2108_v37  ;;  %v2135_v42 = vrot.slane %v2134_v0, 1 }
 0x7a9   : > { %v2119_v30 = vadd.f32 %v2118_v17, %v2117_v20  ;;  %v2144_v32 = vrot.slane %v2143_v19, 1 }
 0x7aa   : > { %v2136_v59 = vadd.f32 %v2135_v42, %v2134_v0  ;;  %v2146_v48 = vmul.f32 0.03125, %v2110_v3 }
 0x7ab   : > { %v2145_v15 = vadd.f32 %v2144_v32, %v2143_v19  ;;  %v2147_v49 = vmul.f32 0.03125, %v2119_v30  ;;  %v2225_v19 = vld [vmem:[%s4022_s4 + $0x8] sm:$0xff] }
 0x7ac   : > { %v2148_v7 = vmul.f32 0.03125, %v2136_v59  ;;  %v2150_v11 = vmul.f32 %v2146_v48, %v2146_v48  ;;  %v2156_v39 = vsub.f32 %v3889_v60, %v2146_v48  ;;  %v2158_v22 = vsub.f32 %v3907_v16, %v2146_v48  ;;  %v2184_v16 = vpop.permute.xlu1 %2183 }
 0x7ad   : > { %v2149_v36 = vmul.f32 0.03125, %v2145_v15  ;;  %v2151_v56 = vmul.f32 %v2147_v49, %v2147_v49  ;;  %v2157_v27 = vsub.f32 %v3892_v5, %v2147_v49  ;;  %v2159_v47 = vsub.f32 %v3910_v28, %v2147_v49  ;;  %v2204_v5 = vpop.permute.xlu0 %2203 }
 0x7ae   : > { %v2152_v50 = vsub.f32 %v2148_v7, %v2150_v11  ;;  %v2154_v18 = vsub.f32 %v3883_v45, %v2146_v48  ;;  %v2155_v25 = vsub.f32 %v3886_v10, %v2147_v49  ;;  %v2160_v53 = vsub.f32 %v3919_v41, %v2146_v48 }
 0x7af   : > { %v2153_v62 = vsub.f32 %v2149_v36, %v2151_v56  ;;  %v2161_v4 = vsub.f32 %v3922_v51, %v2147_v49 }
 0x7b0   : > { %v2162_v60 = vadd.f32 1e-05, %v2152_v50  ;;  %v2188_v57 = vpop.permute.xlu1 %2187 }
 0x7b1   : > { %v2163_v54 = vadd.f32 1e-05, %v2153_v62  ;;  %v2208_v51 = vpop.permute.xlu0 %2207 }
 0x7b2   : > { %2932 = vrsqrt.f32 %v2162_v60 }
 0x7b3   : > { %2934 = vrsqrt.f32 %v2163_v54 }
 0x7b4   : > { %v2212_v52 = vpop.permute.xlu1 %2211 }
 0x7b5   : > { %v2229_v42 = vpop.permute.xlu0 %2228 }
 0x7b8   : > { %v2234_v32 = vpop.permute.xlu1 %2233 }
 0x7bc   : > { %v2933_v40 = vpop.eup %2932 }
 0x7bd   : > { %v2935_v28 = vpop.eup %2934  ;;  %v2168_v35 = vmul.f32 %v2933_v40, %v2156_v39  ;;  %v2170_v13 = vmul.f32 %v2933_v40, %v2158_v22  ;;  %v2166_v45 = vmul.f32 %v2933_v40, %v2154_v18  ;;  %v2172_v14 = vmul.f32 %v2933_v40, %v2160_v53 }
 0x7be   : > { %v2169_v10 = vmul.f32 %v2935_v28, %v2157_v27  ;;  %v2171_v8 = vmul.f32 %v2935_v28, %v2159_v47  ;;  %v2167_v41 = vmul.f32 %v2935_v28, %v2155_v25  ;;  %v2173_v46 = vmul.f32 %v2935_v28, %v2161_v4 }
 0x7bf   : > { %v2192_v55 = vmul.f32 %v2180_v61, %v2168_v35  ;;  %v2194_v21 = vmul.f32 %v2184_v16, %v2170_v13  ;;  %v2190_v24 = vmul.f32 %v2176_v31, %v2166_v45  ;;  %v2196_v63 = vmul.f32 %v2188_v57, %v2172_v14 }
 0x7c0   : > { %v2193_v2 = vmul.f32 %v2180_v61, %v2169_v10  ;;  %v2195_v6 = vmul.f32 %v2184_v16, %v2171_v8  ;;  %v2191_v44 = vmul.f32 %v2176_v31, %v2167_v41  ;;  %v2197_v33 = vmul.f32 %v2188_v57, %v2173_v46  ;;  %v2224_v61 = vld [vmem:[%s4022_s4] sm:$0xff] }
 0x7c1   : > { %v2214_v1 = vadd.f32 %v2200_v29, %v2190_v24  ;;  %v2216_v12 = vadd.f32 %v2204_v5, %v2192_v55  ;;  %v2220_v34 = vadd.f32 %v2212_v52, %v2196_v63  ;;  %v2218_v26 = vadd.f32 %v2208_v51, %v2194_v21 }
 0x7c2   : > { %v2215_v38 = vadd.f32 %v2200_v29, %v2191_v44  ;;  %v2217_v37 = vadd.f32 %v2204_v5, %v2193_v2  ;;  %v2221_v43 = vadd.f32 %v2212_v52, %v2197_v33  ;;  %v2219_v20 = vadd.f32 %v2208_v51, %v2195_v6 }
 0x7c3   : > { %v2816_v9 = vpack.c.bf16 %v2216_v12, %v2214_v1  ;;  %v2820_v23 = vpack.c.bf16 %v2220_v34, %v2218_v26 }
 0x7c4   : > { %v2814_v0 = vpack.c.bf16 %v2217_v37, %v2215_v38  ;;  %v2818_v17 = vpack.c.bf16 %v2221_v43, %v2219_v20  ;;  %v2373_v43 = vpop.permute.xlu1 %2372 }
 0x7c6   : > { %2815 = vmatprep.subr.bf16.mxu1 %v2814_v0 }
 0x7c7   : > { %2817 = vmatpush1.bf16.msra.mxu1 %v2816_v9 }
 0x7c8   : > { %2819 = vmatprep.subr.bf16.mxu1 %v2818_v17  ;;  %v2385_v20 = vpop.permute.xlu1 %2384 }
 0x7cb   : > { %2821 = vmatpush1.bf16.msra.mxu1 %v2820_v23  ;;  %v2377_v23 = vpop.permute.xlu0 %2376 }
 0x7ce   : > { %2615 = vmatmul.mubr.msk.f32.vlgmr.msra.gmra.mrb[56].mxu1 %vm609_vm2, %v2224_v61 }
 0x7cf   : > { %2312 = vmatprep.mubr.f32.mxu1 %v3013_v58 }
 0x7d2   : > { %2616 = vmatmul.mubr.msk.f32.gmra.mrb[58].mxu1 %vm609_vm2, %v2225_v19 }
 0x8a1   : > { %v2308_v3 = vpop.f32.mrb[56].mxu1 }
 0x8a2   : > { %v2310_v30 = vpop.f32.mrb[57].mxu1  ;;  %v2309_v59 = vadd.f32 %v2308_v3, %v2229_v42 }
 0x8a3   : > { %v2311_v48 = vadd.f32 %v2310_v30, %v2229_v42 }
 0x8a4   : > { %v2333_v39 = vmul.f32 %v2309_v59, %v2309_v59 }
 0x8a5   : > { %v2314_v15 = vpop.f32.mrb[58].mxu1  ;;  %v2334_v22 = vmul.f32 %v2311_v48, %v2311_v48 }
 0x8a6   : > { %v2315_v49 = vadd.f32 %v2314_v15, %v2234_v32  ;;  %v2316_v7 = vpop.f32.mrb[59].mxu1 }
 0x8a7   : > { %v2317_v11 = vadd.f32 %v2316_v7, %v2234_v32 }
 0x8a8   : > { %v2319_v29 = vadd.f32 %v2315_v49, %v2309_v59  ;;  %v2335_v58 = vmul.f32 %v2315_v49, %v2315_v49 }
 0x8a9   : > { %v2326_v36 = vadd.f32 %v2317_v11, %v2311_v48  ;;  %v2336_v56 = vmul.f32 %v2317_v11, %v2317_v11 }
 0x8aa   : > { %v2320_v27 = vrot.slane %v2319_v29, 4  ;;  %v2337_v47 = vadd.f32 %v2335_v58, %v2333_v39 }
 0x8ab   : > { %v2327_v50 = vrot.slane %v2326_v36, 4  ;;  %v2344_v18 = vadd.f32 %v2336_v56, %v2334_v22 }
 0x8ac   : > { %v2321_v25 = vadd.f32 %v2320_v27, %v2319_v29  ;;  %v2338_v53 = vrot.slane %v2337_v47, 4 }
 0x8ad   : > { %v2328_v62 = vadd.f32 %v2327_v50, %v2326_v36  ;;  %v2345_v4 = vrot.slane %v2344_v18, 4 }
 0x8ae   : > { %v2322_v60 = vrot.slane %v2321_v25, 2  ;;  %v2339_v54 = vadd.f32 %v2338_v53, %v2337_v47 }
 0x8af   : > { %v2329_v16 = vrot.slane %v2328_v62, 2  ;;  %v2346_v31 = vadd.f32 %v2345_v4, %v2344_v18 }
 0x8b0   : > { %v2323_v57 = vadd.f32 %v2322_v60, %v2321_v25  ;;  %v2340_v5 = vrot.slane %v2339_v54, 2 }
 0x8b1   : > { %v2330_v40 = vadd.f32 %v2329_v16, %v2328_v62  ;;  %v2347_v28 = vrot.slane %v2346_v31, 2 }
 0x8b2   : > { %v2324_v35 = vrot.slane %v2323_v57, 1  ;;  %v2341_v13 = vadd.f32 %v2340_v5, %v2339_v54 }
 0x8b3   : > { %v2331_v45 = vrot.slane %v2330_v40, 1  ;;  %v2348_v14 = vadd.f32 %v2347_v28, %v2346_v31 }
 0x8b4   : > { %v2342_v10 = vrot.slane %v2341_v13, 1  ;;  %v2325_v8 = vadd.f32 %v2324_v35, %v2323_v57 }
 0x8b5   : > { %v2349_v41 = vrot.slane %v2348_v14, 1  ;;  %v2332_v46 = vadd.f32 %v2331_v45, %v2330_v40 }
 0x8b6   : > { %v2343_v52 = vadd.f32 %v2342_v10, %v2341_v13  ;;  %v2351_v51 = vmul.f32 0.0625, %v2325_v8 }
 0x8b7   : > { %v2350_v55 = vadd.f32 %v2349_v41, %v2348_v14  ;;  %v2352_v21 = vmul.f32 0.0625, %v2332_v46 }
 0x8b8   : > { %v2353_v24 = vmul.f32 0.0625, %v2343_v52  ;;  %v2355_v63 = vmul.f32 %v2351_v51, %v2351_v51  ;;  %v2359_v2 = vsub.f32 %v2309_v59, %v2351_v51  ;;  %v2361_v6 = vsub.f32 %v2315_v49, %v2351_v51 }
 0x8b9   : > { %v2354_v44 = vmul.f32 0.0625, %v2350_v55  ;;  %v2356_v33 = vmul.f32 %v2352_v21, %v2352_v21  ;;  %v2360_v1 = vsub.f32 %v2311_v48, %v2352_v21  ;;  %v2362_v12 = vsub.f32 %v2317_v11, %v2352_v21  ;;  %v2389_v48 = vpop.permute.xlu1 %2388 }
 0x8ba   : > { %v2357_v34 = vsub.f32 %v2353_v24, %v2355_v63 }
 0x8bb   : > { %v2358_v26 = vsub.f32 %v2354_v44, %v2356_v33 }
 0x8bc   : > { %v2363_v38 = vadd.f32 1e-05, %v2357_v34 }
 0x8bd   : > { %v2364_v37 = vadd.f32 1e-05, %v2358_v26 }
 0x8be   : > { %2936 = vrsqrt.f32 %v2363_v38 }
 0x8bf   : > { %2938 = vrsqrt.f32 %v2364_v37 }
 0x8c8   : > { %v2937_v9 = vpop.eup %2936 }
 0x8c9   : > { %v2939_v0 = vpop.eup %2938  ;;  %v2367_v17 = vmul.f32 %v2937_v9, %v2359_v2  ;;  %v2369_v61 = vmul.f32 %v2937_v9, %v2361_v6 }
 0x8ca   : > { %v2368_v19 = vmul.f32 %v2939_v0, %v2360_v1  ;;  %v2370_v3 = vmul.f32 %v2939_v0, %v2362_v12 }
 0x8cb   : > { %v2379_v42 = vmul.f32 %v2373_v43, %v2367_v17  ;;  %v2381_v30 = vmul.f32 %v2377_v23, %v2369_v61 }
 0x8cc   : > { %v2380_v32 = vmul.f32 %v2373_v43, %v2368_v19  ;;  %v2382_v59 = vmul.f32 %v2377_v23, %v2370_v3 }
 0x8cd   : > { %v2391_v15 = vadd.f32 %v2385_v20, %v2379_v42  ;;  %v2393_v49 = vadd.f32 %v2389_v48, %v2381_v30 }
 0x8ce   : > { %v2392_v7 = vadd.f32 %v2385_v20, %v2380_v32  ;;  %v2394_v11 = vadd.f32 %v2389_v48, %v2382_v59 }
 0x8cf   : > { %v2395_v39 = vmul.f32 %v2391_v15, %v2391_v15  ;;  %v2397_v29 = vmul.f32 %v2393_v49, %v2393_v49 }
 0x8d0   : > { %v2396_v58 = vmul.f32 %v2392_v7, %v2392_v7  ;;  %v2398_v22 = vmul.f32 %v2394_v11, %v2394_v11 }
 0x8d1   : > { %v2399_v36 = vadd.f32 %v2397_v29, %v2395_v39 }
 0x8d2   : > { %v2406_v56 = vadd.f32 %v2398_v22, %v2396_v58 }
 0x8d3   : > { %v2400_v27 = vrot.slane %v2399_v36, 4 }
 0x8d4   : > { %v2407_v47 = vrot.slane %v2406_v56, 4 }
 0x8d5   : > { %v2401_v50 = vadd.f32 %v2400_v27, %v2399_v36 }
 0x8d6   : > { %v2408_v18 = vadd.f32 %v2407_v47, %v2406_v56 }
 0x8d7   : > { %v2402_v25 = vrot.slane %v2401_v50, 2 }
 0x8d8   : > { %v2409_v53 = vrot.slane %v2408_v18, 2 }
 0x8d9   : > { %v2403_v62 = vadd.f32 %v2402_v25, %v2401_v50 }
 0x8da   : > { %v2410_v4 = vadd.f32 %v2409_v53, %v2408_v18 }
 0x8db   : > { %v2404_v60 = vrot.slane %v2403_v62, 1 }
 0x8dc   : > { %v2411_v54 = vrot.slane %v2410_v4, 1 }
 0x8dd   : > { %v2405_v16 = vadd.f32 %v2404_v60, %v2403_v62 }
 0x8de   : > { %v2412_v31 = vadd.f32 %v2411_v54, %v2410_v4 }
 0x8df   : > { %v2413_v57 = vmax.f32 %v2405_v16, 1e-24 }
 0x8e0   : > { %v2414_v5 = vmax.f32 %v2412_v31, 1e-24 }
 0x8e1   : > { %2940 = vrsqrt.f32 %v2413_v57 }
 0x8e2   : > { %2942 = vrsqrt.f32 %v2414_v5 }
 0x8e9   : > { %2432 = sbr.rel (!%p3112_p5) target bundleno = 2317 (0x90d), region = 56 }
 0x8eb   : > { %v2941_v40 = vpop.eup %2940 }
 0x8ec   : > { %v2943_v28 = vpop.eup %2942  ;;  %v2417_v35 = vmul.f32 %v2941_v40, %v2391_v15  ;;  %v2419_v13 = vmul.f32 %v2941_v40, %v2393_v49 }
 0x8ed   : > { %v2418_v45 = vmul.f32 %v2943_v28, %v2392_v7  ;;  %v2420_v14 = vmul.f32 %v2943_v28, %v2394_v11 }
 0x8ee   : > { %2421 = vst [vmem:[%s311_s12] sm:$0xff] %v2417_v35  ;;  %2423 = vst [vmem:[%s311_s12 + $0x10] sm:$0xff] %v2419_v13 }
 0x8ef   : > { %2422 = vst [vmem:[%s311_s12 + $0x8] sm:$0xff] %v2418_v45  ;;  %2424 = vst [vmem:[%s311_s12 + $0x18] sm:$0xff] %v2420_v14 }
 0x8f0   : > { %s4038_s19 = smov (!%p2435_p11, %s2434_s19), 2 }
 0x8f1   : > { %s3960_s17 = sshll.u32 %s4038_s19, 8 }
 0x8f2   : > { %s2439_s20 = ssub.s32 512, %s3960_s17 }
 0x8f3   : > { %2440 = vsyncadd %s3952_s13, %s2439_s20  ;;  %p2620_p12 = scmp.ne.s32.totalorder %s3960_s17, 0  ;;  %s2627_s15 = sshll.u32 %s3095_s9, 8 }
 0x8f4   : > { %s3969_s23 = scalar_lea.hbm %s4026_s8, %s2627_s15  ;;  %s2622_s24 = sshll.u32 %s4038_s19, 3 }
 0x8f5   : > { %s2446_s25 = sshll.u32 %s311_s12, 4  ;;  %s3026_s10 = smov [#allocation2]   ;;  %s3972_s25 = int_to_ptr.vmem [resolvable:$true] %s2446_s25 }
 0x8f6   : > { %s2948_s26 = scalar_lea.vmem %s3972_s25, %s3960_s17  ;;  %s2952_s18 = sshll.u32 %s3026_s10, 4  ;;  %s2953_s18 = int_to_ptr.vmem [resolvable:$false] %s2952_s18 }
 0x8f7   : > { %p2949_p13 = scmp.ne.s32.totalorder %s3972_s25, %s2948_s26  ;;  %s2954_s9 = scalar_lea.vmem %s2953_s18, 1024 }
 0x8f8   : > { %p2955_p2 = scmp.lt.s32.totalorder %s3972_s25, %s2953_s18  ;;  %p2956_p3 = scmp.lt.s32.totalorder %s2954_s9, %s2948_s26 }
 0x8f9   : > { %p2950_p0 = pnand %p2949_p13, %p2620_p12 }
 0x8fa   : > { %p2957_p4 = por %p2956_p3, %p2955_p2 }
 0x8fb   : > { %p2951_p1 = pneg %p2950_p0 }
 0x8fd   : > { %p2958_p5 = pnand %p2957_p4, %p2951_p1 }
 0x8ff   : > { %2961 = shalt.err (!%p2958_p5)
}
 0x900   : > { %s2962_s12 = scalar_lea.hbm %s3969_s23, %s3960_s17  ;;  %s2966_s21 = scalar_lea.hbm %s4026_s8, 768 }
 0x901   : > { %p2963_p7 = scmp.ne.s32.totalorder %s3969_s23, %s2962_s12  ;;  %p2967_p10 = scmp.lt.u32.totalorder %s3969_s23, %s4026_s8 }
 0x902   : > { %p2968_p11 = scmp.lt.u32.totalorder %s2966_s21, %s2962_s12  ;;  %p2970_p0 = scmp.lt.u32.totalorder %s2962_s12, %s3969_s23 }
 0x903   : > { %p2964_p8 = pnand %p2963_p7, %p2620_p12 }
 0x904   : > { %p2969_p13 = por %p2968_p11, %p2967_p10 }
 0x905   : > { %p2965_p9 = pneg %p2964_p8 }
 0x906   : > { %p2971_p1 = por %p2970_p0, %p2969_p13 }
 0x908   : > { %p2972_p2 = pnand %p2971_p1, %p2965_p9 }
 0x90a   : > { %2975 = shalt.err (!%p2972_p2)
}
 0x90b   : > { %s3027_s10 = smov 256   ;;  %s3028_s18 = smov 384  }
 0x90c   : > { %2452 = dma.vmem_to_hbm [thread:$0]  (%p2620_p12), %s3972_s25, %s3960_s17, %s3969_s23, %s3952_s13, %s3027_s10, %s3028_s18, %s2622_s24  }
 0x90d PF: > { %p2827_p3 = scmp.ge.s32.totalorder %s3010_s30, 2  ;;  %s2461_s9 = sand.u32 1, %s2998_s27  }
 0x90e   : > { %s2462_s12 = scalar_lea.sflag [#allocation3], %s2461_s9 }
 0x90f   : > { %p2824_p4 = pnand %p2827_p3, %p3116_p6 }
 0x911   : > { %2993 = dma.done.wait (!%p2824_p4), %s2462_s12, 512  }
 0x912   : > { %2995 = vsyncadd (!%p2824_p4), %s2462_s12, 4294966784  ;;  %p18_p5 = scmp.ge.s32.totalorder %s3099_s11, 4   ;;  %s4031_s27 = smov %s3002_s28 }
 0x913   : > { %s4032_s28 = smov %s3006_s29  ;;  %s4033_s29 = smov %s3110_s14 }
 0x914   : > { %s4034_s30 = smov %s3099_s11  ;;  %20 = sbr.rel (!%p18_p5) target bundleno = 3 (0x3), region = 89 }
 0x91b   :  { %2467 = vsyncpa [#allocation3], 1 }
 0x91c   :  { %2469 = vsyncpa [#allocation3 + $0x1], 1 }

</bundles_post_ra>
